<compile_context>
chip_gen: v7x
topology: tpu7x:2x2x1
jax: 0.10.0
libtpu: 0.0.40
codegen_flags: <defaults>
</compile_context>

<pallas_src>
import functools
import math

import jax
import jax.numpy as jnp
from jax import lax
from jax.experimental import pallas as pl
from jax.experimental.pallas import tpu as pltpu
import numpy as np


# ----------------------------- in-kernel helpers -----------------------------

def _layernorm(x, g, b, eps):
    # PyTorch nn.LayerNorm: biased variance over the last dim (f32 throughout).
    mean = jnp.mean(x, axis=-1, keepdims=True)
    var = jnp.mean(jnp.square(x - mean), axis=-1, keepdims=True)
    return (x - mean) * lax.rsqrt(var + eps) * g + b


def _gelu_new(x):
    # HuggingFace "gelu_new" (tanh approximation) used by GPT-2.
    c = jnp.sqrt(2.0 / jnp.pi).astype(x.dtype)
    return 0.5 * x * (1.0 + jnp.tanh(c * (x + 0.044715 * x * x * x)))


# --------------------------------- kernel ------------------------------------

def block_kernel(x_ref,
                 ln1g_ref, ln1b_ref,
                 wq_ref, bq_ref, wkv_ref, bkv_ref,
                 wap_ref, bap_ref,
                 ln2g_ref, ln2b_ref,
                 wfc_ref, bfc_ref,
                 wmp_ref, bmp_ref,
                 o_ref,
                 kh_sc, vh_sc,
                 *, n_head, scale, eps, matmul_dtype):
    T = x_ref.shape[1]
    C = x_ref.shape[2]
    TQ = o_ref.shape[1]          # query-tile length == key-chunk length
    H = n_head
    D = C // H
    NK = T // TQ                 # number of key chunks (== nq)
    md = matmul_dtype

    qt = pl.program_id(1)
    q_start = pl.multiple_of(qt * TQ, TQ)

    g1 = ln1g_ref[0]
    b1 = ln1b_ref[0]

    # ---------------- K/V projection: once per batch element ----------------
    # qt is the inner "arbitrary" grid axis, so the qt == 0 step of each batch
    # element runs first and the bf16 K/V scratch persists across the remaining
    # query tiles (no per-tile recompute of LN1(x_full) / K / V).
    @pl.when(qt == 0)
    def _():
        h_full = _layernorm(x_ref[0], g1, b1, eps)                       # (T, C) f32
        kv = jnp.dot(h_full.astype(md), wkv_ref[...],
                     preferred_element_type=jnp.float32) + bkv_ref[0]    # (T, 2C) f32
        # Per-head lane split happens once per batch element (amortised over all
        # query tiles) and lands directly in bf16 scratch, chunked along the
        # sequence so the attention loop can index chunks on a leading dim.
        for kb in range(NK):                       # static Python loop
            r0 = kb * TQ
            kh_sc[kb] = jnp.stack(
                [kv[r0:r0 + TQ, h * D:(h + 1) * D] for h in range(H)],
                axis=0).astype(md)                                       # (H, TQ, D)
            vh_sc[kb] = jnp.stack(
                [kv[r0:r0 + TQ, C + h * D:C + (h + 1) * D] for h in range(H)],
                axis=0).astype(md)

    # ---------------- Q projection for this query tile ----------------
    x_t = x_ref[0, pl.ds(q_start, TQ), :]                                # (TQ, C) f32
    h_t = _layernorm(x_t, g1, b1, eps)
    q = jnp.dot(h_t.astype(md), wq_ref[...],
                preferred_element_type=jnp.float32) + bq_ref[0]          # (TQ, C) f32
    if scale:
        # Pre-scale q (O(TQ*C)) instead of scaling the score matrix.
        q = q * jnp.float32(1.0 / math.sqrt(D))
    qh = jnp.stack([q[:, h * D:(h + 1) * D] for h in range(H)],
                   axis=0).astype(md)                                    # (H, TQ, D)

    # ---------------- causal flash attention over key chunks 0..qt ----------------
    row = q_start + lax.broadcasted_iota(jnp.int32, (TQ, TQ), 0)         # global rows
    col = lax.broadcasted_iota(jnp.int32, (TQ, TQ), 1)                   # chunk-local cols

    m0 = jnp.full((H, TQ, 1), -jnp.inf, jnp.float32)
    l0 = jnp.zeros((H, TQ, 1), jnp.float32)
    acc0 = jnp.zeros((H, TQ, D), jnp.float32)

    def kv_step(kb, carry):
        m_prev, l_prev, acc_prev = carry
        k_blk = kh_sc[kb]                                                # (H, TQ, D) bf16
        v_blk = vh_sc[kb]                                                # (H, TQ, D) bf16
        s = jnp.einsum('hqd,hkd->hqk', qh, k_blk,
                       preferred_element_type=jnp.float32)               # (H, TQ, TQ) f32
        # Additive -10000 bias matches the reference masked_bias; only the
        # diagonal chunk (kb == qt) actually masks anything, and exp(logit-1e4)
        # underflows to exactly 0 in f32, so results match the masked softmax.
        bias = jnp.where(kb * TQ + col <= row, 0.0, -10000.0).astype(jnp.float32)
        s = s + bias[None, :, :]
        m_new = jnp.maximum(m_prev, jnp.max(s, axis=-1, keepdims=True))
        alpha = jnp.exp(m_prev - m_new)
        p = jnp.exp(s - m_new)
        l_new = alpha * l_prev + jnp.sum(p, axis=-1, keepdims=True)
        acc_new = alpha * acc_prev + jnp.einsum(
            'hqk,hkd->hqd', p.astype(md), v_blk,
            preferred_element_type=jnp.float32)                          # (H, TQ, D) f32
        return m_new, l_new, acc_new

    # Causally dead key chunks (kb > qt) are skipped entirely.
    _, l_fin, acc_fin = lax.fori_loop(0, qt + 1, kv_step, (m0, l0, acc0))

    # Softmax denominator reciprocal on the (otherwise idle) EUP.
    attn = (acc_fin * pl.reciprocal(l_fin, approx=True)).astype(md)      # (H, TQ, D)

    # ---------------- attention c_proj with the head merge folded in ----------------
    # W_proj is pre-reshaped to (H, D, C); a head-batched matmul + sum over the
    # leading head dim replaces the lane-dim concat of per-head outputs.
    ao = jnp.einsum('hqd,hdc->hqc', attn, wap_ref[...],
                    preferred_element_type=jnp.float32)                  # (H, TQ, C)
    a = jnp.sum(ao, axis=0) + bap_ref[0]                                 # (TQ, C)
    # TODO(synk): attn_dropout / resid_dropout are identity in eval mode (omitted).

    x1 = x_t + a                                                         # residual 1 (f32)

    # ---------------- ln_2 + MLP ----------------
    h2 = _layernorm(x1, ln2g_ref[0], ln2b_ref[0], eps)
    hid = jnp.dot(h2.astype(md), wfc_ref[...],
                  preferred_element_type=jnp.float32) + bfc_ref[0]       # (TQ, 4C)
    hid = _gelu_new(hid)                                                 # f32 elementwise
    mo = jnp.dot(hid.astype(md), wmp_ref[...],
                 preferred_element_type=jnp.float32) + bmp_ref[0]        # (TQ, C)

    o_ref[0] = (x1 + mo).astype(o_ref.dtype)                             # residual 2


# --------------------------------- wrapper -----------------------------------

def gpt2_block(x, params, *, n_head, scale=True, eps=1e-5, q_block=None,
               matmul_dtype=jnp.bfloat16, vmem_limit_bytes=64 * 1024 * 1024):
    """x: (B, T, C) f32.  params: 12 arrays in HF GPT-2 Block order."""
    (ln1g, ln1b, wqkv, bqkv, wap, bap, ln2g, ln2b, wfc, bfc, wmp, bmp) = params
    B, T, C = x.shape
    assert C % n_head == 0
    D = C // n_head

    # v5e/v6e (128 MiB VMEM): q_block 256-512; v7x (64 MiB): prefer 128.
    if q_block is None:
        q_block = T if T <= 256 else 256
    assert T % q_block == 0 and q_block % 8 == 0
    nq = T // q_block

    # Split the fused QKV projection: K/V are projected over the full sequence
    # once per batch element (inside the kernel), Q per query tile.
    wq = wqkv[:, :C].astype(matmul_dtype)
    wkv = wqkv[:, C:].astype(matmul_dtype)
    bq = bqkv[:, :C]
    bkv = bqkv[:, C:]
    # attn c_proj reshaped to (H, D, C) so the head merge folds into a
    # head-batched matmul inside the kernel (no lane-dim concat).
    wap_r = wap.reshape(n_head, D, C).astype(matmul_dtype)
    wfc_m = wfc.astype(matmul_dtype)
    wmp_m = wmp.astype(matmul_dtype)

    def rep2(shape):
        # Constant-index blocks: fetched once, resident across the whole grid.
        return pl.BlockSpec(shape, lambda b, qt: (0, 0))

    def rep3(shape):
        return pl.BlockSpec(shape, lambda b, qt: (0, 0, 0))

    in_specs = [
        # x block index depends only on b; with qt inner+sequential the block is
        # fetched once per batch element (no per-tile re-DMA).
        pl.BlockSpec((1, T, C), lambda b, qt: (b, 0, 0)),
        rep2((1, C)), rep2((1, C)),                         # ln_1 gamma/beta
        rep2((C, C)), rep2((1, C)),                         # W_q / b_q
        rep2((C, 2 * C)), rep2((1, 2 * C)),                 # W_kv / b_kv
        rep3((n_head, D, C)), rep2((1, C)),                 # attn c_proj W/b
        rep2((1, C)), rep2((1, C)),                         # ln_2 gamma/beta
        rep2((C, 4 * C)), rep2((1, 4 * C)),                 # mlp c_fc W/b
        rep2((4 * C, C)), rep2((1, C)),                     # mlp c_proj W/b
    ]
    out_spec = pl.BlockSpec((1, q_block, C), lambda b, qt: (b, qt, 0))
    # NOTE: for demo-sized C (< 128 lanes) the output store is a masked partial
    # store; at real GPT-2 sizes (C>=768) the output is lane-dense as required.

    kernel = functools.partial(block_kernel, n_head=n_head, scale=scale, eps=eps,
                               matmul_dtype=matmul_dtype)
    return pl.pallas_call(
        kernel,
        out_shape=jax.ShapeDtypeStruct((B, T, C), x.dtype),
        grid_spec=pltpu.PrefetchScalarGridSpec(
            num_scalar_prefetch=0,
            grid=(B, nq),
            in_specs=in_specs,
            out_specs=out_spec,
            scratch_shapes=[
                # Per-head K/V in bf16, chunked along the sequence:
                # (num_key_chunks, H, q_block, D); persists across the qt axis.
                pltpu.VMEM((nq, n_head, q_block, D), matmul_dtype),
                pltpu.VMEM((nq, n_head, q_block, D), matmul_dtype),
            ]),
        compiler_params=pltpu.CompilerParams(
            # qt must be sequential ("arbitrary") so the K/V scratch written at
            # qt == 0 is reused by later query tiles of the same batch element;
            # the batch axis stays "parallel" for megacore sharding.
            dimension_semantics=("parallel", "arbitrary"),
            vmem_limit_bytes=vmem_limit_bytes,
        ),
    )(x, ln1g, ln1b, wq, bq, wkv, bkv, wap_r, bap, ln2g, ln2b, wfc_m, bfc, wmp_m, bmp)


# ----------------------------- pure-JAX reference ----------------------------

def gpt2_block_ref(x, params, *, n_head, scale=True, eps=1e-5,
                   matmul_dtype=jnp.bfloat16):
    (ln1g, ln1b, wqkv, bqkv, wap, bap, ln2g, ln2b, wfc, bfc, wmp, bmp) = params
    B, T, C = x.shape
    D = C // n_head
    md = matmul_dtype

    def ln(z, g, b):
        mu = jnp.mean(z, axis=-1, keepdims=True)
        var = jnp.mean((z - mu) ** 2, axis=-1, keepdims=True)
        return (z - mu) / jnp.sqrt(var + eps) * g[0] + b[0]

    def dot(a, w):
        return jnp.dot(a.astype(md), w.astype(md), preferred_element_type=jnp.float32)

    h = ln(x, ln1g, ln1b)
    qkv = dot(h, wqkv) + bqkv[0]
    q, k, v = jnp.split(qkv, 3, axis=-1)
    if scale:
        q = q * jnp.float32(1.0 / math.sqrt(D))
    q = q.reshape(B, T, n_head, D).transpose(0, 2, 1, 3)
    k = k.reshape(B, T, n_head, D).transpose(0, 2, 1, 3)
    v = v.reshape(B, T, n_head, D).transpose(0, 2, 1, 3)
    w = jnp.einsum("bhqd,bhkd->bhqk", q.astype(md), k.astype(md),
                   preferred_element_type=jnp.float32)
    causal = jnp.tril(jnp.ones((T, T), bool))
    w = jnp.where(causal, w, -10000.0)
    p = jax.nn.softmax(w, axis=-1)
    a = jnp.einsum("bhqk,bhkd->bhqd", p.astype(md), v.astype(md),
                   preferred_element_type=jnp.float32)
    a = a.transpose(0, 2, 1, 3).reshape(B, T, C)
    a = dot(a, wap) + bap[0]
    x1 = x + a
    h2 = ln(x1, ln2g, ln2b)
    hid = dot(h2, wfc) + bfc[0]
    hid = 0.5 * hid * (1.0 + jnp.tanh(jnp.sqrt(2.0 / jnp.pi) * (hid + 0.044715 * hid ** 3)))
    m = dot(hid, wmp) + bmp[0]
    return x1 + m


# ----------------------------------- main -------------------------------------

if __name__ == "__main__":
    # config: n_embd=32, n_head=4, n_ctx=8 (== seq len), layer_norm_epsilon=1e-5
    B, T, C, H = 2, 8, 32, 4
    key = jax.random.PRNGKey(0)
    kx, k1, k2, k3, k4 = jax.random.split(key, 5)

    x = jax.random.normal(kx, (B, T, C), dtype=jnp.float32)

    std = 0.02  # GPT-2 Conv1D init: normal(0, 0.02), biases zero; LN: gamma=1, beta=0
    params = (
        jnp.ones((1, C), jnp.float32),                                   # ln_1 gamma
        jnp.zeros((1, C), jnp.float32),                                  # ln_1 beta
        std * jax.random.normal(k1, (C, 3 * C), dtype=jnp.float32),      # c_attn W
        jnp.zeros((1, 3 * C), jnp.float32),                              # c_attn b
        std * jax.random.normal(k2, (C, C), dtype=jnp.float32),          # attn c_proj W
        jnp.zeros((1, C), jnp.float32),                                  # attn c_proj b
        jnp.ones((1, C), jnp.float32),                                   # ln_2 gamma
        jnp.zeros((1, C), jnp.float32),                                  # ln_2 beta
        std * jax.random.normal(k3, (C, 4 * C), dtype=jnp.float32),      # mlp c_fc W
        jnp.zeros((1, 4 * C), jnp.float32),                              # mlp c_fc b
        std * jax.random.normal(k4, (4 * C, C), dtype=jnp.float32),      # mlp c_proj W
        jnp.zeros((1, C), jnp.float32),                                  # mlp c_proj b
    )

    out = gpt2_block(x, params, n_head=H, scale=True, eps=1e-5)
    out = jax.block_until_ready(out)

    ref = jax.block_until_ready(
        gpt2_block_ref(x, params, n_head=H, scale=True, eps=1e-5))
    # Kernel and reference use identical bf16-operand / f32-accumulate matmuls;
    # remaining delta comes from the online-softmax normalization order and the
    # approx EUP reciprocal / rsqrt (≲1e-3).
    np.testing.assert_allclose(np.asarray(out), np.asarray(ref), rtol=2e-3, atol=2e-3)

    print("KERNEL_OK")
</pallas_src>

<mosaic_0001>
module attributes {stable_mosaic.version = 11 : i64} {
  func.func @block_kernel(%arg0: i32, %arg1: i32, %arg2: memref<1x8x32xf32, #tpu.memory_space<vmem>>, %arg3: memref<1x32xf32, #tpu.memory_space<vmem>>, %arg4: memref<1x32xf32, #tpu.memory_space<vmem>>, %arg5: memref<32x32xbf16, #tpu.memory_space<vmem>>, %arg6: memref<1x32xf32, #tpu.memory_space<vmem>>, %arg7: memref<32x64xbf16, #tpu.memory_space<vmem>>, %arg8: memref<1x64xf32, #tpu.memory_space<vmem>>, %arg9: memref<4x8x32xbf16, #tpu.memory_space<vmem>>, %arg10: memref<1x32xf32, #tpu.memory_space<vmem>>, %arg11: memref<1x32xf32, #tpu.memory_space<vmem>>, %arg12: memref<1x32xf32, #tpu.memory_space<vmem>>, %arg13: memref<32x128xbf16, #tpu.memory_space<vmem>>, %arg14: memref<1x128xf32, #tpu.memory_space<vmem>>, %arg15: memref<128x32xbf16, #tpu.memory_space<vmem>>, %arg16: memref<1x32xf32, #tpu.memory_space<vmem>>, %arg17: memref<1x8x32xf32, #tpu.memory_space<vmem>>, %arg18: memref<1x4x8x8xbf16, #tpu.memory_space<vmem>>, %arg19: memref<1x4x8x8xbf16, #tpu.memory_space<vmem>>) attributes {dimension_semantics = [#tpu.dimension_semantics<parallel>, #tpu.dimension_semantics<arbitrary>], iteration_bounds = array<i64: 2, 1>, scalar_prefetch = 0 : i64, scratch_operands = 2 : i64, tpu.core_type = #tpu.core_type<tc>, window_params = [{transform_indices = @transform_0, window_bounds = array<i64: 1, 8, 32>}, {pipeline_mode = #tpu.pipeline_mode<synchronous>, transform_indices = @transform_1, window_bounds = array<i64: 1, 32>}, {pipeline_mode = #tpu.pipeline_mode<synchronous>, transform_indices = @transform_2, window_bounds = array<i64: 1, 32>}, {pipeline_mode = #tpu.pipeline_mode<synchronous>, transform_indices = @transform_3, window_bounds = array<i64: 32, 32>}, {pipeline_mode = #tpu.pipeline_mode<synchronous>, transform_indices = @transform_4, window_bounds = array<i64: 1, 32>}, {pipeline_mode = #tpu.pipeline_mode<synchronous>, transform_indices = @transform_5, window_bounds = array<i64: 32, 64>}, {pipeline_mode = #tpu.pipeline_mode<synchronous>, transform_indices = @transform_6, window_bounds = array<i64: 1, 64>}, {pipeline_mode = #tpu.pipeline_mode<synchronous>, transform_indices = @transform_7, window_bounds = array<i64: 4, 8, 32>}, {pipeline_mode = #tpu.pipeline_mode<synchronous>, transform_indices = @transform_8, window_bounds = array<i64: 1, 32>}, {pipeline_mode = #tpu.pipeline_mode<synchronous>, transform_indices = @transform_9, window_bounds = array<i64: 1, 32>}, {pipeline_mode = #tpu.pipeline_mode<synchronous>, transform_indices = @transform_10, window_bounds = array<i64: 1, 32>}, {pipeline_mode = #tpu.pipeline_mode<synchronous>, transform_indices = @transform_11, window_bounds = array<i64: 32, 128>}, {pipeline_mode = #tpu.pipeline_mode<synchronous>, transform_indices = @transform_12, window_bounds = array<i64: 1, 128>}, {pipeline_mode = #tpu.pipeline_mode<synchronous>, transform_indices = @transform_13, window_bounds = array<i64: 128, 32>}, {pipeline_mode = #tpu.pipeline_mode<synchronous>, transform_indices = @transform_14, window_bounds = array<i64: 1, 32>}, {transform_indices = @transform_15, window_bounds = array<i64: 1, 8, 32>}]} {
    %c8_i32 = arith.constant 8 : i32
    %0 = arith.muli %arg1, %c8_i32 : i32
    %1 = tpu.assume_multiple %0, 8 : i32
    %c0 = arith.constant 0 : index
    %c0_0 = arith.constant 0 : index
    %2 = vector.load %arg3[%c0, %c0_0] : memref<1x32xf32, #tpu.memory_space<vmem>>, vector<1x32xf32>
    %3 = vector.shape_cast %2 : vector<1x32xf32> to vector<32xf32>
    %c0_1 = arith.constant 0 : index
    %c0_2 = arith.constant 0 : index
    %4 = vector.load %arg4[%c0_1, %c0_2] : memref<1x32xf32, #tpu.memory_space<vmem>>, vector<1x32xf32>
    %5 = vector.shape_cast %4 : vector<1x32xf32> to vector<32xf32>
    %c0_i32 = arith.constant 0 : i32
    %6 = arith.cmpi eq, %arg1, %c0_i32 : i32
    %7 = arith.extui %6 : i1 to i32
    %c0_i32_3 = arith.constant 0 : i32
    %8 = arith.cmpi ne, %7, %c0_i32_3 : i32
    scf.if %8 {
      %c0_54 = arith.constant 0 : index
      %c0_55 = arith.constant 0 : index
      %c0_56 = arith.constant 0 : index
      %142 = vector.load %arg2[%c0_54, %c0_55, %c0_56] : memref<1x8x32xf32, #tpu.memory_space<vmem>>, vector<1x8x32xf32>
      %143 = vector.shape_cast %142 : vector<1x8x32xf32> to vector<8x32xf32>
      %cst_57 = arith.constant dense<0.000000e+00> : vector<8xf32>
      %144 = vector.multi_reduction <add>, %143, %cst_57 [1] : vector<8x32xf32> to vector<8xf32>
      %145 = vector.shape_cast %144 : vector<8xf32> to vector<8x1xf32>
      %cst_58 = arith.constant 3.200000e+01 : f32
      %146 = vector.broadcast %cst_58 : f32 to vector<8x1xf32>
      %147 = arith.divf %145, %146 : vector<8x1xf32>
      %148 = vector.broadcast %147 : vector<8x1xf32> to vector<8x32xf32>
      %149 = arith.subf %143, %148 : vector<8x32xf32>
      %150 = arith.mulf %149, %149 : vector<8x32xf32>
      %cst_59 = arith.constant dense<0.000000e+00> : vector<8xf32>
      %151 = vector.multi_reduction <add>, %150, %cst_59 [1] : vector<8x32xf32> to vector<8xf32>
      %152 = vector.shape_cast %151 : vector<8xf32> to vector<8x1xf32>
      %cst_60 = arith.constant 3.200000e+01 : f32
      %153 = vector.broadcast %cst_60 : f32 to vector<8x1xf32>
      %154 = arith.divf %152, %153 : vector<8x1xf32>
      %155 = vector.broadcast %147 : vector<8x1xf32> to vector<8x32xf32>
      %156 = arith.subf %143, %155 : vector<8x32xf32>
      %cst_61 = arith.constant 9.99999974E-6 : f32
      %157 = vector.broadcast %cst_61 : f32 to vector<8x1xf32>
      %158 = arith.addf %154, %157 : vector<8x1xf32>
      %159 = math.rsqrt %158 : vector<8x1xf32>
      %160 = vector.broadcast %159 : vector<8x1xf32> to vector<8x32xf32>
      %161 = arith.mulf %156, %160 : vector<8x32xf32>
      %162 = vector.shape_cast %3 : vector<32xf32> to vector<1x32xf32>
      %163 = vector.broadcast %162 : vector<1x32xf32> to vector<8x32xf32>
      %164 = arith.mulf %161, %163 : vector<8x32xf32>
      %165 = vector.shape_cast %5 : vector<32xf32> to vector<1x32xf32>
      %166 = vector.broadcast %165 : vector<1x32xf32> to vector<8x32xf32>
      %167 = arith.addf %164, %166 : vector<8x32xf32>
      %168 = arith.truncf %167 : vector<8x32xf32> to vector<8x32xbf16>
      %c0_62 = arith.constant 0 : index
      %c0_63 = arith.constant 0 : index
      %169 = vector.load %arg7[%c0_62, %c0_63] : memref<32x64xbf16, #tpu.memory_space<vmem>>, vector<32x64xbf16>
      %cst_64 = arith.constant dense<0.000000e+00> : vector<8x64xf32>
      %170 = tpu.matmul %168, %169, %cst_64 {dimension_numbers = #tpu.dot_dimension_numbers<[1], [0], [0], [1], [0, 0, 1, 1], [], []>} : vector<8x32xbf16>, vector<32x64xbf16>, vector<8x64xf32> -> vector<8x64xf32>
      %c0_65 = arith.constant 0 : index
      %c0_66 = arith.constant 0 : index
      %171 = vector.load %arg8[%c0_65, %c0_66] : memref<1x64xf32, #tpu.memory_space<vmem>>, vector<1x64xf32>
      %172 = vector.shape_cast %171 : vector<1x64xf32> to vector<64xf32>
      %173 = vector.shape_cast %172 : vector<64xf32> to vector<1x64xf32>
      %174 = vector.broadcast %173 : vector<1x64xf32> to vector<8x64xf32>
      %175 = arith.addf %170, %174 : vector<8x64xf32>
      %176 = vector.extract_strided_slice %175 {offsets = [0, 0], sizes = [8, 8], strides = [1, 1]} : vector<8x64xf32> to vector<8x8xf32>
      %177 = vector.extract_strided_slice %175 {offsets = [0, 8], sizes = [8, 8], strides = [1, 1]} : vector<8x64xf32> to vector<8x8xf32>
      %178 = vector.extract_strided_slice %175 {offsets = [0, 16], sizes = [8, 8], strides = [1, 1]} : vector<8x64xf32> to vector<8x8xf32>
      %179 = vector.extract_strided_slice %175 {offsets = [0, 24], sizes = [8, 8], strides = [1, 1]} : vector<8x64xf32> to vector<8x8xf32>
      %180 = vector.shape_cast %176 : vector<8x8xf32> to vector<1x8x8xf32>
      %181 = vector.shape_cast %177 : vector<8x8xf32> to vector<1x8x8xf32>
      %182 = vector.shape_cast %178 : vector<8x8xf32> to vector<1x8x8xf32>
      %183 = vector.shape_cast %179 : vector<8x8xf32> to vector<1x8x8xf32>
      %184 = tpu.concatenate %180, %181, %182, %183 in 0 : vector<1x8x8xf32>, vector<1x8x8xf32>, vector<1x8x8xf32>, vector<1x8x8xf32> -> vector<4x8x8xf32>
      %185 = arith.truncf %184 : vector<4x8x8xf32> to vector<4x8x8xbf16>
      %c0_67 = arith.constant 0 : index
      %c0_68 = arith.constant 0 : index
      %c0_69 = arith.constant 0 : index
      %c0_70 = arith.constant 0 : index
      %186 = vector.load %arg18[%c0_67, %c0_68, %c0_69, %c0_70] : memref<1x4x8x8xbf16, #tpu.memory_space<vmem>>, vector<1x4x8x8xbf16>
      %187 = vector.shape_cast %186 : vector<1x4x8x8xbf16> to vector<4x8x8xbf16>
      %188 = vector.shape_cast %185 : vector<4x8x8xbf16> to vector<1x4x8x8xbf16>
      tpu.vector_store %arg18[%c0_67, %c0_68, %c0_69, %c0_70], %188 {strides = array<i32>} : memref<1x4x8x8xbf16, #tpu.memory_space<vmem>>, vector<1x4x8x8xbf16>,
      %189 = vector.extract_strided_slice %175 {offsets = [0, 32], sizes = [8, 8], strides = [1, 1]} : vector<8x64xf32> to vector<8x8xf32>
      %190 = vector.extract_strided_slice %175 {offsets = [0, 40], sizes = [8, 8], strides = [1, 1]} : vector<8x64xf32> to vector<8x8xf32>
      %191 = vector.extract_strided_slice %175 {offsets = [0, 48], sizes = [8, 8], strides = [1, 1]} : vector<8x64xf32> to vector<8x8xf32>
      %192 = vector.extract_strided_slice %175 {offsets = [0, 56], sizes = [8, 8], strides = [1, 1]} : vector<8x64xf32> to vector<8x8xf32>
      %193 = vector.shape_cast %189 : vector<8x8xf32> to vector<1x8x8xf32>
      %194 = vector.shape_cast %190 : vector<8x8xf32> to vector<1x8x8xf32>
      %195 = vector.shape_cast %191 : vector<8x8xf32> to vector<1x8x8xf32>
      %196 = vector.shape_cast %192 : vector<8x8xf32> to vector<1x8x8xf32>
      %197 = tpu.concatenate %193, %194, %195, %196 in 0 : vector<1x8x8xf32>, vector<1x8x8xf32>, vector<1x8x8xf32>, vector<1x8x8xf32> -> vector<4x8x8xf32>
      %198 = arith.truncf %197 : vector<4x8x8xf32> to vector<4x8x8xbf16>
      %c0_71 = arith.constant 0 : index
      %c0_72 = arith.constant 0 : index
      %c0_73 = arith.constant 0 : index
      %c0_74 = arith.constant 0 : index
      %199 = vector.load %arg19[%c0_71, %c0_72, %c0_73, %c0_74] : memref<1x4x8x8xbf16, #tpu.memory_space<vmem>>, vector<1x4x8x8xbf16>
      %200 = vector.shape_cast %199 : vector<1x4x8x8xbf16> to vector<4x8x8xbf16>
      %201 = vector.shape_cast %198 : vector<4x8x8xbf16> to vector<1x4x8x8xbf16>
      tpu.vector_store %arg19[%c0_71, %c0_72, %c0_73, %c0_74], %201 {strides = array<i32>} : memref<1x4x8x8xbf16, #tpu.memory_space<vmem>>, vector<1x4x8x8xbf16>,
    } else {
    }
    %c0_4 = arith.constant 0 : index
    %9 = arith.index_cast %1 : i32 to index
    %c0_5 = arith.constant 0 : index
    %10 = vector.load %arg2[%c0_4, %9, %c0_5] : memref<1x8x32xf32, #tpu.memory_space<vmem>>, vector<1x8x32xf32>
    %11 = vector.shape_cast %10 : vector<1x8x32xf32> to vector<8x32xf32>
    %cst = arith.constant dense<0.000000e+00> : vector<8xf32>
    %12 = vector.multi_reduction <add>, %11, %cst [1] : vector<8x32xf32> to vector<8xf32>
    %13 = vector.shape_cast %12 : vector<8xf32> to vector<8x1xf32>
    %cst_6 = arith.constant 3.200000e+01 : f32
    %14 = vector.broadcast %cst_6 : f32 to vector<8x1xf32>
    %15 = arith.divf %13, %14 : vector<8x1xf32>
    %16 = vector.broadcast %15 : vector<8x1xf32> to vector<8x32xf32>
    %17 = arith.subf %11, %16 : vector<8x32xf32>
    %18 = arith.mulf %17, %17 : vector<8x32xf32>
    %cst_7 = arith.constant dense<0.000000e+00> : vector<8xf32>
    %19 = vector.multi_reduction <add>, %18, %cst_7 [1] : vector<8x32xf32> to vector<8xf32>
    %20 = vector.shape_cast %19 : vector<8xf32> to vector<8x1xf32>
    %cst_8 = arith.constant 3.200000e+01 : f32
    %21 = vector.broadcast %cst_8 : f32 to vector<8x1xf32>
    %22 = arith.divf %20, %21 : vector<8x1xf32>
    %23 = vector.broadcast %15 : vector<8x1xf32> to vector<8x32xf32>
    %24 = arith.subf %11, %23 : vector<8x32xf32>
    %cst_9 = arith.constant 9.99999974E-6 : f32
    %25 = vector.broadcast %cst_9 : f32 to vector<8x1xf32>
    %26 = arith.addf %22, %25 : vector<8x1xf32>
    %27 = math.rsqrt %26 : vector<8x1xf32>
    %28 = vector.broadcast %27 : vector<8x1xf32> to vector<8x32xf32>
    %29 = arith.mulf %24, %28 : vector<8x32xf32>
    %30 = vector.shape_cast %3 : vector<32xf32> to vector<1x32xf32>
    %31 = vector.broadcast %30 : vector<1x32xf32> to vector<8x32xf32>
    %32 = arith.mulf %29, %31 : vector<8x32xf32>
    %33 = vector.shape_cast %5 : vector<32xf32> to vector<1x32xf32>
    %34 = vector.broadcast %33 : vector<1x32xf32> to vector<8x32xf32>
    %35 = arith.addf %32, %34 : vector<8x32xf32>
    %36 = arith.truncf %35 : vector<8x32xf32> to vector<8x32xbf16>
    %c0_10 = arith.constant 0 : index
    %c0_11 = arith.constant 0 : index
    %37 = vector.load %arg5[%c0_10, %c0_11] : memref<32x32xbf16, #tpu.memory_space<vmem>>, vector<32x32xbf16>
    %cst_12 = arith.constant dense<0.000000e+00> : vector<8x32xf32>
    %38 = tpu.matmul %36, %37, %cst_12 {dimension_numbers = #tpu.dot_dimension_numbers<[1], [0], [0], [1], [0, 0, 1, 1], [], []>} : vector<8x32xbf16>, vector<32x32xbf16>, vector<8x32xf32> -> vector<8x32xf32>
    %c0_13 = arith.constant 0 : index
    %c0_14 = arith.constant 0 : index
    %39 = vector.load %arg6[%c0_13, %c0_14] : memref<1x32xf32, #tpu.memory_space<vmem>>, vector<1x32xf32>
    %40 = vector.shape_cast %39 : vector<1x32xf32> to vector<32xf32>
    %41 = vector.shape_cast %40 : vector<32xf32> to vector<1x32xf32>
    %42 = vector.broadcast %41 : vector<1x32xf32> to vector<8x32xf32>
    %43 = arith.addf %38, %42 : vector<8x32xf32>
    %cst_15 = arith.constant 0.353553385 : f32
    %44 = vector.broadcast %cst_15 : f32 to vector<8x32xf32>
    %45 = arith.mulf %43, %44 : vector<8x32xf32>
    %46 = vector.extract_strided_slice %45 {offsets = [0, 0], sizes = [8, 8], strides = [1, 1]} : vector<8x32xf32> to vector<8x8xf32>
    %47 = vector.extract_strided_slice %45 {offsets = [0, 8], sizes = [8, 8], strides = [1, 1]} : vector<8x32xf32> to vector<8x8xf32>
    %48 = vector.extract_strided_slice %45 {offsets = [0, 16], sizes = [8, 8], strides = [1, 1]} : vector<8x32xf32> to vector<8x8xf32>
    %49 = vector.extract_strided_slice %45 {offsets = [0, 24], sizes = [8, 8], strides = [1, 1]} : vector<8x32xf32> to vector<8x8xf32>
    %50 = vector.shape_cast %46 : vector<8x8xf32> to vector<1x8x8xf32>
    %51 = vector.shape_cast %47 : vector<8x8xf32> to vector<1x8x8xf32>
    %52 = vector.shape_cast %48 : vector<8x8xf32> to vector<1x8x8xf32>
    %53 = vector.shape_cast %49 : vector<8x8xf32> to vector<1x8x8xf32>
    %54 = tpu.concatenate %50, %51, %52, %53 in 0 : vector<1x8x8xf32>, vector<1x8x8xf32>, vector<1x8x8xf32>, vector<1x8x8xf32> -> vector<4x8x8xf32>
    %55 = arith.truncf %54 : vector<4x8x8xf32> to vector<4x8x8xbf16>
    %56 = tpu.iota {dimensions = array<i32: 0>} : vector<8x8xi32>
    %57 = vector.broadcast %1 : i32 to vector<8x8xi32>
    %58 = arith.addi %57, %56 : vector<8x8xi32>
    %59 = tpu.iota {dimensions = array<i32: 1>} : vector<8x8xi32>
    %cst_16 = arith.constant 0xFF800000 : f32
    %60 = vector.broadcast %cst_16 : f32 to vector<4x8x1xf32>
    %cst_17 = arith.constant 0.000000e+00 : f32
    %61 = vector.broadcast %cst_17 : f32 to vector<4x8x1xf32>
    %cst_18 = arith.constant 0.000000e+00 : f32
    %62 = vector.broadcast %cst_18 : f32 to vector<4x8x8xf32>
    %c1_i32 = arith.constant 1 : i32
    %63 = arith.addi %arg1, %c1_i32 : i32
    %c0_i32_19 = arith.constant 0 : i32
    %64 = arith.subi %63, %c0_i32_19 : i32
    %65 = arith.addi %c0_i32_19, %64 : i32
    %c1_i32_20 = arith.constant 1 : i32
    %66:3 = scf.for %arg20 = %c0_i32_19 to %65 step %c1_i32_20 iter_args(%arg21 = %60, %arg22 = %61, %arg23 = %62) -> (vector<4x8x1xf32>, vector<4x8x1xf32>, vector<4x8x8xf32>)  : i32 {
      %142 = arith.index_cast %arg20 : i32 to index
      %c0_54 = arith.constant 0 : index
      %c0_55 = arith.constant 0 : index
      %c0_56 = arith.constant 0 : index
      %143 = vector.load %arg18[%142, %c0_54, %c0_55, %c0_56] : memref<1x4x8x8xbf16, #tpu.memory_space<vmem>>, vector<1x4x8x8xbf16>
      %144 = vector.shape_cast %143 : vector<1x4x8x8xbf16> to vector<4x8x8xbf16>
      %145 = arith.index_cast %arg20 : i32 to index
      %c0_57 = arith.constant 0 : index
      %c0_58 = arith.constant 0 : index
      %c0_59 = arith.constant 0 : index
      %146 = vector.load %arg19[%145, %c0_57, %c0_58, %c0_59] : memref<1x4x8x8xbf16, #tpu.memory_space<vmem>>, vector<1x4x8x8xbf16>
      %147 = vector.shape_cast %146 : vector<1x4x8x8xbf16> to vector<4x8x8xbf16>
      "tpu.trace_start"() <{level = 10 : i32, message = "hqd,hkd->hqk"}> : () -> ()
      %cst_60 = arith.constant dense<0.000000e+00> : vector<4x8x8xf32>
      %148 = tpu.matmul %55, %144, %cst_60 {dimension_numbers = #tpu.dot_dimension_numbers<[2], [2], [1], [1], [0, 0, 0, 1, 1, 1], [0], [0]>} : vector<4x8x8xbf16>, vector<4x8x8xbf16>, vector<4x8x8xf32> -> vector<4x8x8xf32>
      "tpu.trace_stop"() : () -> ()
      %c8_i32_61 = arith.constant 8 : i32
      %149 = arith.muli %arg20, %c8_i32_61 : i32
      %150 = vector.broadcast %149 : i32 to vector<8x8xi32>
      %151 = arith.addi %150, %59 : vector<8x8xi32>
      %152 = arith.cmpi sle, %151, %58 : vector<8x8xi32>
      %cst_62 = arith.constant 0.000000e+00 : f32
      %cst_63 = arith.constant -1.000000e+04 : f32
      %153 = vector.broadcast %cst_62 : f32 to vector<8x8xf32>
      %154 = vector.broadcast %cst_63 : f32 to vector<8x8xf32>
      %155 = arith.select %152, %153, %154 : vector<8x8xi1>, vector<8x8xf32>
      %156 = vector.shape_cast %155 : vector<8x8xf32> to vector<1x8x8xf32>
      %157 = vector.broadcast %156 : vector<1x8x8xf32> to vector<4x8x8xf32>
      %158 = arith.addf %148, %157 : vector<4x8x8xf32>
      %cst_64 = arith.constant dense<0xFF800000> : vector<4x8xf32>
      %159 = vector.multi_reduction <maximumf>, %158, %cst_64 [2] : vector<4x8x8xf32> to vector<4x8xf32>
      %160 = vector.shape_cast %159 : vector<4x8xf32> to vector<4x8x1xf32>
      %161 = arith.maximumf %arg21, %160 : vector<4x8x1xf32>
      %162 = arith.subf %arg21, %161 : vector<4x8x1xf32>
      %163 = math.exp %162 : vector<4x8x1xf32>
      %164 = vector.broadcast %161 : vector<4x8x1xf32> to vector<4x8x8xf32>
      %165 = arith.subf %158, %164 : vector<4x8x8xf32>
      %166 = math.exp %165 : vector<4x8x8xf32>
      %167 = arith.mulf %163, %arg22 : vector<4x8x1xf32>
      %cst_65 = arith.constant dense<0.000000e+00> : vector<4x8xf32>
      %168 = vector.multi_reduction <add>, %166, %cst_65 [2] : vector<4x8x8xf32> to vector<4x8xf32>
      %169 = vector.shape_cast %168 : vector<4x8xf32> to vector<4x8x1xf32>
      %170 = arith.addf %167, %169 : vector<4x8x1xf32>
      %171 = vector.broadcast %163 : vector<4x8x1xf32> to vector<4x8x8xf32>
      %172 = arith.mulf %171, %arg23 : vector<4x8x8xf32>
      %173 = arith.truncf %166 : vector<4x8x8xf32> to vector<4x8x8xbf16>
      "tpu.trace_start"() <{level = 10 : i32, message = "hqk,hkd->hqd"}> : () -> ()
      %cst_66 = arith.constant dense<0.000000e+00> : vector<4x8x8xf32>
      %174 = tpu.matmul %173, %147, %cst_66 {dimension_numbers = #tpu.dot_dimension_numbers<[2], [1], [1], [2], [0, 0, 0, 1, 1, 2], [0], [0]>} : vector<4x8x8xbf16>, vector<4x8x8xbf16>, vector<4x8x8xf32> -> vector<4x8x8xf32>
      "tpu.trace_stop"() : () -> ()
      %175 = arith.addf %172, %174 : vector<4x8x8xf32>
      scf.yield %161, %170, %175 : vector<4x8x1xf32>, vector<4x8x1xf32>, vector<4x8x8xf32>
    }
    %67 = tpu.reciprocal %66#1 {approx = true} : vector<4x8x1xf32> -> vector<4x8x1xf32>
    %68 = vector.broadcast %67 : vector<4x8x1xf32> to vector<4x8x8xf32>
    %69 = arith.mulf %66#2, %68 : vector<4x8x8xf32>
    %70 = arith.truncf %69 : vector<4x8x8xf32> to vector<4x8x8xbf16>
    %c0_21 = arith.constant 0 : index
    %c0_22 = arith.constant 0 : index
    %c0_23 = arith.constant 0 : index
    %71 = vector.load %arg9[%c0_21, %c0_22, %c0_23] : memref<4x8x32xbf16, #tpu.memory_space<vmem>>, vector<4x8x32xbf16>
    "tpu.trace_start"() <{level = 10 : i32, message = "hqd,hdc->hqc"}> : () -> ()
    %cst_24 = arith.constant dense<0.000000e+00> : vector<4x8x32xf32>
    %72 = tpu.matmul %70, %71, %cst_24 {dimension_numbers = #tpu.dot_dimension_numbers<[2], [1], [1], [2], [0, 0, 0, 1, 1, 2], [0], [0]>} : vector<4x8x8xbf16>, vector<4x8x32xbf16>, vector<4x8x32xf32> -> vector<4x8x32xf32>
    "tpu.trace_stop"() : () -> ()
    %cst_25 = arith.constant dense<0.000000e+00> : vector<8x32xf32>
    %73 = vector.multi_reduction <add>, %72, %cst_25 [0] : vector<4x8x32xf32> to vector<8x32xf32>
    %c0_26 = arith.constant 0 : index
    %c0_27 = arith.constant 0 : index
    %74 = vector.load %arg10[%c0_26, %c0_27] : memref<1x32xf32, #tpu.memory_space<vmem>>, vector<1x32xf32>
    %75 = vector.shape_cast %74 : vector<1x32xf32> to vector<32xf32>
    %76 = vector.shape_cast %75 : vector<32xf32> to vector<1x32xf32>
    %77 = vector.broadcast %76 : vector<1x32xf32> to vector<8x32xf32>
    %78 = arith.addf %73, %77 : vector<8x32xf32>
    %79 = arith.addf %11, %78 : vector<8x32xf32>
    %c0_28 = arith.constant 0 : index
    %c0_29 = arith.constant 0 : index
    %80 = vector.load %arg11[%c0_28, %c0_29] : memref<1x32xf32, #tpu.memory_space<vmem>>, vector<1x32xf32>
    %81 = vector.shape_cast %80 : vector<1x32xf32> to vector<32xf32>
    %c0_30 = arith.constant 0 : index
    %c0_31 = arith.constant 0 : index
    %82 = vector.load %arg12[%c0_30, %c0_31] : memref<1x32xf32, #tpu.memory_space<vmem>>, vector<1x32xf32>
    %83 = vector.shape_cast %82 : vector<1x32xf32> to vector<32xf32>
    %cst_32 = arith.constant dense<0.000000e+00> : vector<8xf32>
    %84 = vector.multi_reduction <add>, %79, %cst_32 [1] : vector<8x32xf32> to vector<8xf32>
    %85 = vector.shape_cast %84 : vector<8xf32> to vector<8x1xf32>
    %cst_33 = arith.constant 3.200000e+01 : f32
    %86 = vector.broadcast %cst_33 : f32 to vector<8x1xf32>
    %87 = arith.divf %85, %86 : vector<8x1xf32>
    %88 = vector.broadcast %87 : vector<8x1xf32> to vector<8x32xf32>
    %89 = arith.subf %79, %88 : vector<8x32xf32>
    %90 = arith.mulf %89, %89 : vector<8x32xf32>
    %cst_34 = arith.constant dense<0.000000e+00> : vector<8xf32>
    %91 = vector.multi_reduction <add>, %90, %cst_34 [1] : vector<8x32xf32> to vector<8xf32>
    %92 = vector.shape_cast %91 : vector<8xf32> to vector<8x1xf32>
    %cst_35 = arith.constant 3.200000e+01 : f32
    %93 = vector.broadcast %cst_35 : f32 to vector<8x1xf32>
    %94 = arith.divf %92, %93 : vector<8x1xf32>
    %95 = vector.broadcast %87 : vector<8x1xf32> to vector<8x32xf32>
    %96 = arith.subf %79, %95 : vector<8x32xf32>
    %cst_36 = arith.constant 9.99999974E-6 : f32
    %97 = vector.broadcast %cst_36 : f32 to vector<8x1xf32>
    %98 = arith.addf %94, %97 : vector<8x1xf32>
    %99 = math.rsqrt %98 : vector<8x1xf32>
    %100 = vector.broadcast %99 : vector<8x1xf32> to vector<8x32xf32>
    %101 = arith.mulf %96, %100 : vector<8x32xf32>
    %102 = vector.shape_cast %81 : vector<32xf32> to vector<1x32xf32>
    %103 = vector.broadcast %102 : vector<1x32xf32> to vector<8x32xf32>
    %104 = arith.mulf %101, %103 : vector<8x32xf32>
    %105 = vector.shape_cast %83 : vector<32xf32> to vector<1x32xf32>
    %106 = vector.broadcast %105 : vector<1x32xf32> to vector<8x32xf32>
    %107 = arith.addf %104, %106 : vector<8x32xf32>
    %108 = arith.truncf %107 : vector<8x32xf32> to vector<8x32xbf16>
    %c0_37 = arith.constant 0 : index
    %c0_38 = arith.constant 0 : index
    %109 = vector.load %arg13[%c0_37, %c0_38] : memref<32x128xbf16, #tpu.memory_space<vmem>>, vector<32x128xbf16>
    %cst_39 = arith.constant dense<0.000000e+00> : vector<8x128xf32>
    %110 = tpu.matmul %108, %109, %cst_39 {dimension_numbers = #tpu.dot_dimension_numbers<[1], [0], [0], [1], [0, 0, 1, 1], [], []>} : vector<8x32xbf16>, vector<32x128xbf16>, vector<8x128xf32> -> vector<8x128xf32>
    %c0_40 = arith.constant 0 : index
    %c0_41 = arith.constant 0 : index
    %111 = vector.load %arg14[%c0_40, %c0_41] : memref<1x128xf32, #tpu.memory_space<vmem>>, vector<1x128xf32>
    %112 = vector.shape_cast %111 : vector<1x128xf32> to vector<128xf32>
    %113 = vector.shape_cast %112 : vector<128xf32> to vector<1x128xf32>
    %114 = vector.broadcast %113 : vector<1x128xf32> to vector<8x128xf32>
    %115 = arith.addf %110, %114 : vector<8x128xf32>
    %cst_42 = arith.constant 0.636619746 : f32
    %116 = math.sqrt %cst_42 : f32
    %cst_43 = arith.constant 5.000000e-01 : f32
    %117 = vector.broadcast %cst_43 : f32 to vector<8x128xf32>
    %118 = arith.mulf %117, %115 : vector<8x128xf32>
    %cst_44 = arith.constant 4.471500e-02 : f32
    %119 = vector.broadcast %cst_44 : f32 to vector<8x128xf32>
    %120 = arith.mulf %119, %115 : vector<8x128xf32>
    %121 = arith.mulf %120, %115 : vector<8x128xf32>
    %122 = arith.mulf %121, %115 : vector<8x128xf32>
    %123 = arith.addf %115, %122 : vector<8x128xf32>
    %124 = vector.broadcast %116 : f32 to vector<8x128xf32>
    %125 = arith.mulf %124, %123 : vector<8x128xf32>
    %126 = math.tanh %125 : vector<8x128xf32>
    %cst_45 = arith.constant 1.000000e+00 : f32
    %127 = vector.broadcast %cst_45 : f32 to vector<8x128xf32>
    %128 = arith.addf %127, %126 : vector<8x128xf32>
    %129 = arith.mulf %118, %128 : vector<8x128xf32>
    %130 = arith.truncf %129 : vector<8x128xf32> to vector<8x128xbf16>
    %c0_46 = arith.constant 0 : index
    %c0_47 = arith.constant 0 : index
    %131 = vector.load %arg15[%c0_46, %c0_47] : memref<128x32xbf16, #tpu.memory_space<vmem>>, vector<128x32xbf16>
    %cst_48 = arith.constant dense<0.000000e+00> : vector<8x32xf32>
    %132 = tpu.matmul %130, %131, %cst_48 {dimension_numbers = #tpu.dot_dimension_numbers<[1], [0], [0], [1], [0, 0, 1, 1], [], []>} : vector<8x128xbf16>, vector<128x32xbf16>, vector<8x32xf32> -> vector<8x32xf32>
    %c0_49 = arith.constant 0 : index
    %c0_50 = arith.constant 0 : index
    %133 = vector.load %arg16[%c0_49, %c0_50] : memref<1x32xf32, #tpu.memory_space<vmem>>, vector<1x32xf32>
    %134 = vector.shape_cast %133 : vector<1x32xf32> to vector<32xf32>
    %135 = vector.shape_cast %134 : vector<32xf32> to vector<1x32xf32>
    %136 = vector.broadcast %135 : vector<1x32xf32> to vector<8x32xf32>
    %137 = arith.addf %132, %136 : vector<8x32xf32>
    %138 = arith.addf %79, %137 : vector<8x32xf32>
    %c0_51 = arith.constant 0 : index
    %c0_52 = arith.constant 0 : index
    %c0_53 = arith.constant 0 : index
    %139 = vector.load %arg17[%c0_51, %c0_52, %c0_53] : memref<1x8x32xf32, #tpu.memory_space<vmem>>, vector<1x8x32xf32>
    %140 = vector.shape_cast %139 : vector<1x8x32xf32> to vector<8x32xf32>
    %141 = vector.shape_cast %138 : vector<8x32xf32> to vector<1x8x32xf32>
    tpu.vector_store %arg17[%c0_51, %c0_52, %c0_53], %141 {strides = array<i32>} : memref<1x8x32xf32, #tpu.memory_space<vmem>>, vector<1x8x32xf32>,
    return
  }
  func.func @transform_0(%arg0: i32, %arg1: i32) -> (i32, i32, i32) {
    %c0_i32 = arith.constant 0 : i32
    %c0_i32_0 = arith.constant 0 : i32
    %c0_i32_1 = arith.constant 0 : i32
    return %arg0, %c0_i32, %c0_i32_0 : i32, i32, i32
  }
  func.func @transform_1(%arg0: i32, %arg1: i32) -> (i32, i32) {
    %c0_i32 = arith.constant 0 : i32
    %c0_i32_0 = arith.constant 0 : i32
    %c0_i32_1 = arith.constant 0 : i32
    return %c0_i32, %c0_i32_0 : i32, i32
  }
  func.func @transform_2(%arg0: i32, %arg1: i32) -> (i32, i32) {
    %c0_i32 = arith.constant 0 : i32
    %c0_i32_0 = arith.constant 0 : i32
    %c0_i32_1 = arith.constant 0 : i32
    return %c0_i32, %c0_i32_0 : i32, i32
  }
  func.func @transform_3(%arg0: i32, %arg1: i32) -> (i32, i32) {
    %c0_i32 = arith.constant 0 : i32
    %c0_i32_0 = arith.constant 0 : i32
    %c0_i32_1 = arith.constant 0 : i32
    return %c0_i32, %c0_i32_0 : i32, i32
  }
  func.func @transform_4(%arg0: i32, %arg1: i32) -> (i32, i32) {
    %c0_i32 = arith.constant 0 : i32
    %c0_i32_0 = arith.constant 0 : i32
    %c0_i32_1 = arith.constant 0 : i32
    return %c0_i32, %c0_i32_0 : i32, i32
  }
  func.func @transform_5(%arg0: i32, %arg1: i32) -> (i32, i32) {
    %c0_i32 = arith.constant 0 : i32
    %c0_i32_0 = arith.constant 0 : i32
    %c0_i32_1 = arith.constant 0 : i32
    return %c0_i32, %c0_i32_0 : i32, i32
  }
  func.func @transform_6(%arg0: i32, %arg1: i32) -> (i32, i32) {
    %c0_i32 = arith.constant 0 : i32
    %c0_i32_0 = arith.constant 0 : i32
    %c0_i32_1 = arith.constant 0 : i32
    return %c0_i32, %c0_i32_0 : i32, i32
  }
  func.func @transform_7(%arg0: i32, %arg1: i32) -> (i32, i32, i32) {
    %c0_i32 = arith.constant 0 : i32
    %c0_i32_0 = arith.constant 0 : i32
    %c0_i32_1 = arith.constant 0 : i32
    %c0_i32_2 = arith.constant 0 : i32
    return %c0_i32, %c0_i32_0, %c0_i32_1 : i32, i32, i32
  }
  func.func @transform_8(%arg0: i32, %arg1: i32) -> (i32, i32) {
    %c0_i32 = arith.constant 0 : i32
    %c0_i32_0 = arith.constant 0 : i32
    %c0_i32_1 = arith.constant 0 : i32
    return %c0_i32, %c0_i32_0 : i32, i32
  }
  func.func @transform_9(%arg0: i32, %arg1: i32) -> (i32, i32) {
    %c0_i32 = arith.constant 0 : i32
    %c0_i32_0 = arith.constant 0 : i32
    %c0_i32_1 = arith.constant 0 : i32
    return %c0_i32, %c0_i32_0 : i32, i32
  }
  func.func @transform_10(%arg0: i32, %arg1: i32) -> (i32, i32) {
    %c0_i32 = arith.constant 0 : i32
    %c0_i32_0 = arith.constant 0 : i32
    %c0_i32_1 = arith.constant 0 : i32
    return %c0_i32, %c0_i32_0 : i32, i32
  }
  func.func @transform_11(%arg0: i32, %arg1: i32) -> (i32, i32) {
    %c0_i32 = arith.constant 0 : i32
    %c0_i32_0 = arith.constant 0 : i32
    %c0_i32_1 = arith.constant 0 : i32
    return %c0_i32, %c0_i32_0 : i32, i32
  }
  func.func @transform_12(%arg0: i32, %arg1: i32) -> (i32, i32) {
    %c0_i32 = arith.constant 0 : i32
    %c0_i32_0 = arith.constant 0 : i32
    %c0_i32_1 = arith.constant 0 : i32
    return %c0_i32, %c0_i32_0 : i32, i32
  }
  func.func @transform_13(%arg0: i32, %arg1: i32) -> (i32, i32) {
    %c0_i32 = arith.constant 0 : i32
    %c0_i32_0 = arith.constant 0 : i32
    %c0_i32_1 = arith.constant 0 : i32
    return %c0_i32, %c0_i32_0 : i32, i32
  }
  func.func @transform_14(%arg0: i32, %arg1: i32) -> (i32, i32) {
    %c0_i32 = arith.constant 0 : i32
    %c0_i32_0 = arith.constant 0 : i32
    %c0_i32_1 = arith.constant 0 : i32
    return %c0_i32, %c0_i32_0 : i32, i32
  }
  func.func @transform_15(%arg0: i32, %arg1: i32) -> (i32, i32, i32) {
    %c0_i32 = arith.constant 0 : i32
    %c0_i32_0 = arith.constant 0 : i32
    return %arg0, %arg1, %c0_i32 : i32, i32, i32
  }
}

</mosaic_0001>

<bundles_post_ra>
// kernel: tpu_custom_call.1
= control target key start
LH: loop header
LB: loop body
LE: loop exit
PB: predicated region body
PF: predicated region fallthrough
CT: control target
= control target key end

     0   :  { %s4348_s0 = inlined_call_operand.hbm [shape: f32[2,8,32], index: 0, kind: input, shape index: {}]   ;;  %s4349_s1 = inlined_call_operand.hbm [shape: f32[1,32], index: 1, kind: input, shape index: {}]   ;;  %s4350_s2 = inlined_call_operand.hbm [shape: f32[1,32], index: 2, kind: input, shape index: {}]   ;;  %s4351_s3 = inlined_call_operand.hbm [shape: bf16[32,32], index: 3, kind: input, shape index: {}]   ;;  %s4352_s4 = inlined_call_operand.hbm [shape: f32[1,32], index: 4, kind: input, shape index: {}]   ;;  %s4353_s5 = inlined_call_operand.hbm [shape: bf16[32,64], index: 5, kind: input, shape index: {}]   ;;  %s4354_s6 = inlined_call_operand.hbm [shape: f32[1,64], index: 6, kind: input, shape index: {}]   ;;  %s4355_s7 = inlined_call_operand.hbm [shape: bf16[4,8,32], index: 7, kind: input, shape index: {}]   ;;  %s4356_s8 = inlined_call_operand.hbm [shape: f32[1,32], index: 8, kind: input, shape index: {}]   ;;  %s4357_s9 = inlined_call_operand.hbm [shape: f32[1,32], index: 9, kind: input, shape index: {}]   ;;  %s4358_s10 = inlined_call_operand.hbm [shape: f32[1,32], index: 10, kind: input, shape index: {}]   ;;  %s4359_s11 = inlined_call_operand.hbm [shape: bf16[32,128], index: 11, kind: input, shape index: {}]   ;;  %s4360_s12 = inlined_call_operand.hbm [shape: f32[1,128], index: 12, kind: input, shape index: {}]   ;;  %s4361_s13 = inlined_call_operand.hbm [shape: bf16[128,32], index: 13, kind: input, shape index: {}]   ;;  %s4362_s14 = inlined_call_operand.hbm [shape: f32[1,32], index: 14, kind: input, shape index: {}]   ;;  %s4363_s15 = inlined_call_operand.hbm [shape: f32[2,8,32], index: 15, kind: output, shape index: {}]  }
   0x1   :  { %4376 = sst [smem:[#allocation44_spill]] %s4348_s0 }
   0x2   :  { %4377 = sst [smem:[#allocation45_spill]] %s4349_s1 }
   0x3   :  { %4378 = sst [smem:[#allocation46_spill]] %s4350_s2 }
   0x4   :  { %4379 = sst [smem:[#allocation47_spill]] %s4351_s3 }
   0x5   :  { %4380 = sst [smem:[#allocation48_spill]] %s4363_s15 }
   0x6   :  { %20 = vsyncpa [#allocation5], 0 }
   0x7   :  { %22 = vsyncpa [#allocation5 + $0x1], 0 }
   0x8   :  { %23 = vsyncpa [#allocation8], 0 }
   0x9   :  { %24 = vsyncpa [#allocation11], 0 }
   0xa   :  { %25 = vsyncpa [#allocation14], 0 }
   0xb   :  { %26 = vsyncpa [#allocation17], 0 }
   0xc   :  { %27 = vsyncpa [#allocation20], 0 }
   0xd   :  { %28 = vsyncpa [#allocation23], 0 }
   0xe   :  { %29 = vsyncpa [#allocation26], 0 }
   0xf   :  { %30 = vsyncpa [#allocation6], 0 }
  0x10   :  { %32 = vsyncpa [#allocation6 + $0x1], 0  ;;  %s3530_s18 = smov 0   ;;  %s3532_s19 = smov 0  }
  0x11   :  { %s3534_s20 = smov 0   ;;  %s3536_s21 = smov 0  }
  0x12   :  { %s3538_s22 = smov 0   ;;  %s3540_s23 = smov 0  }
  0x13 LB: > { %4381 = sst [smem:[#allocation38_spill]] %s3349_s18  ;;  %s4364_s24 = sadd.s32 4294967295, %s3369_s23   ;;  %s3369_s23 = sphi %s3540_s23, %s38_s23   ;;  %s3365_s22 = sphi %s3538_s22, %s4436_s22   ;;  %s3361_s21 = sphi %s3536_s21, %s4435_s21   ;;  %s3357_s20 = sphi %s3534_s20, %s4434_s20   ;;  %s3353_s19 = sphi %s3532_s19, %s4432_s19   ;;  %s3349_s18 = sphi %s3530_s18, %s4431_s18  }
  0x14   : > { %4382 = sst [smem:[#allocation39_spill]] %s3353_s19  ;;  %p2172_p0 = scmp.ge.s32.totalorder %s3369_s23, 1 }
  0x15   : > { %4383 = sst [smem:[#allocation40_spill]] %s3357_s20  ;;  %p3564_p1 = scmp.eq.s32.totalorder %s4364_s24, 0 }
  0x16   : > { %4384 = sst [smem:[#allocation41_spill]] %s3361_s21  ;;  %p403_p2 = scmp.lt.s32.totalorder %s3369_s23, 3 }
  0x17   : > { %s4385_s25 = scalar_select %p3564_p1, 1, 0 }
  0x18   : > { %p3569_p3 = pnand %p2172_p0, %p403_p2  ;;  %s3423_s27 = smov [#allocation7]  }
  0x19   : > { %4386 = sst [smem:[#allocation42_spill]] %s4385_s25  ;;  %s416_s28 = sshll.u32 %s3423_s27, 4  ;;  %s417_s28 = int_to_ptr.vmem [resolvable:$true] %s416_s28 }
  0x1a   : > { %s4387_s26 = scalar_select %p3569_p3, 1, 0 }
  0x1b   : > { %p2481_p5 = pneg %p3569_p3  ;;  %s3424_s29 = smov [#allocation10]  }
  0x1c   : > { %4388 = sst [smem:[#allocation43_spill]] %s4387_s26  ;;  %s437_s30 = sshll.u32 %s3424_s29, 4  ;;  %s3582_s30 = int_to_ptr.vmem [resolvable:$true] %s437_s30 }
  0x1d   : > { %p3578_p6 = pnand %p2481_p5, %p3564_p1  ;;  %s3425_s17 = smov [#allocation13]  }
  0x1e   : > { %s3584_s24 = sshll.u32 %s3425_s17, 4  ;;  %s4390_s1 = sld [smem:[#allocation45_spill]]  ;;  %s462_s24 = int_to_ptr.vmem [resolvable:$true] %s3584_s24 }
  0x1f   : > { %p3594_p8 = pneg %p3578_p6 }
  0x24   : > { %s2785_s27 = scalar_lea.hbm %s4390_s1, 16 }
  0x25   : > { %p2786_p7 = scmp.ne.s32.totalorder %s4390_s1, %s2785_s27  ;;  %p2792_p11 = scmp.lt.u32.totalorder %s2785_s27, %s4390_s1 }
  0x27   : > { %p2788_p9 = pnand %p3594_p8, %p2786_p7 }
  0x29   : > { %p2789_p10 = pneg %p2788_p9 }
  0x2b   : > { %p2794_p12 = pnand %p2792_p11, %p2789_p10 }
  0x2d   : > { %2797 = shalt.err (!%p2794_p12)
}
  0x2e   : > { %s2798_s15 = scalar_lea.vmem %s417_s28, 16  ;;  %s2805_s0 = scalar_lea.vmem %s417_s28, 32 }
  0x2f   : > { %p2799_p13 = scmp.ne.s32.totalorder %s417_s28, %s2798_s15  ;;  %p2806_p5 = scmp.lt.s32.totalorder %s417_s28, %s417_s28 }
  0x30   : > { %p2807_p4 = scmp.lt.s32.totalorder %s2805_s0, %s2798_s15 }
  0x31   : > { %p2801_p0 = pnand %p2799_p13, %p3594_p8 }
  0x32   : > { %p2808_p3 = por %p2807_p4, %p2806_p5 }
  0x33   : > { %p2802_p2 = pneg %p2801_p0 }
  0x35   : > { %p2809_p1 = pnand %p2808_p3, %p2802_p2 }
  0x37   : > { %2812 = shalt.err (!%p2809_p1)
}
  0x38   : > { %2484 = dma.hbm_to_vmem [thread:$0]  (!%p3578_p6), %s4390_s1, 16, %s417_s28, [#allocation8]  }
  0x39   : > { %s4392_s3 = sld [smem:[#allocation47_spill]] }
  0x3f   : > { %s2813_s17 = scalar_lea.hbm %s4392_s3, 256 }
  0x40   : > { %p2814_p7 = scmp.ne.s32.totalorder %s4392_s3, %s2813_s17  ;;  %p2820_p1 = scmp.lt.u32.totalorder %s2813_s17, %s4392_s3 }
  0x42   : > { %p2816_p9 = pnand %p2814_p7, %p3594_p8 }
  0x44   : > { %p2817_p4 = pneg %p2816_p9 }
  0x46   : > { %p2822_p3 = pnand %p2820_p1, %p2817_p4 }
  0x48   : > { %2825 = shalt.err (!%p2822_p3)
}
  0x49   : > { %s2826_s28 = scalar_lea.vmem %s3582_s30, 256  ;;  %p2834_p13 = scmp.lt.s32.totalorder %s3582_s30, %s3582_s30 }
  0x4a   : > { %p2827_p10 = scmp.ne.s32.totalorder %s3582_s30, %s2826_s28  ;;  %p2835_p0 = scmp.lt.s32.totalorder %s2826_s28, %s2826_s28 }
  0x4c   : > { %p2829_p11 = pnand %p2827_p10, %p3594_p8  ;;  %p2836_p2 = por %p2835_p0, %p2834_p13 }
  0x4e   : > { %p2830_p12 = pneg %p2829_p11 }
  0x50   : > { %p2837_p5 = pnand %p2836_p2, %p2830_p12 }
  0x52   : > { %2840 = shalt.err (!%p2837_p5)
}
  0x53   : > { %s3426_s18 = smov 64   ;;  %s3427_s19 = smov 4  }
  0x54   : > { %2490 = dma.hbm_to_vmem [thread:$0]  (!%p3578_p6), %s4392_s3, 256, %s3582_s30, [#allocation11], %s3426_s18, %s3426_s18, %s3427_s19  }
  0x55   : > { %s2841_s17 = scalar_lea.hbm %s4353_s5, 256 }
  0x56   : > { %p2842_p7 = scmp.ne.s32.totalorder %s4353_s5, %s2841_s17  ;;  %p2848_p1 = scmp.lt.u32.totalorder %s2841_s17, %s4353_s5 }
  0x58   : > { %p2844_p9 = pnand %p2842_p7, %p3594_p8 }
  0x5a   : > { %p2845_p4 = pneg %p2844_p9 }
  0x5c   : > { %p2850_p3 = pnand %p2848_p1, %p2845_p4 }
  0x5e   : > { %2853 = shalt.err (!%p2850_p3)
}
  0x5f   : > { %s2854_s21 = scalar_lea.vmem %s462_s24, 256  ;;  %p2862_p13 = scmp.lt.s32.totalorder %s462_s24, %s462_s24 }
  0x60   : > { %p2855_p10 = scmp.ne.s32.totalorder %s462_s24, %s2854_s21  ;;  %p2863_p0 = scmp.lt.s32.totalorder %s2854_s21, %s2854_s21 }
  0x62   : > { %p2857_p11 = pnand %p2855_p10, %p3594_p8  ;;  %p2864_p2 = por %p2863_p0, %p2862_p13 }
  0x64   : > { %p2858_p12 = pneg %p2857_p11 }
  0x66   : > { %p2865_p5 = pnand %p2864_p2, %p2858_p12 }
  0x68   : > { %2868 = shalt.err (!%p2865_p5)
}
  0x69   : > { %2496 = dma.hbm_to_vmem [thread:$0]  (!%p3578_p6), %s4353_s5, 256, %s462_s24, [#allocation14], %s3426_s18, %s3426_s18, %s3427_s19  }
  0x6a   : > { %s3428_s26 = smov [#allocation16]   ;;  %s3429_s27 = smov [#allocation19]  }
  0x6b   : > { %s485_s25 = sshll.u32 %s3428_s26, 4  ;;  %s510_s17 = sshll.u32 %s3429_s27, 4  ;;  %s486_s25 = int_to_ptr.vmem [resolvable:$true] %s485_s25  ;;  %s511_s17 = int_to_ptr.vmem [resolvable:$true] %s510_s17 }
  0x6c   : > { %s2869_s28 = scalar_lea.hbm %s4355_s7, 256 }
  0x6d   : > { %p2870_p7 = scmp.ne.s32.totalorder %s4355_s7, %s2869_s28  ;;  %p2876_p1 = scmp.lt.u32.totalorder %s2869_s28, %s4355_s7 }
  0x6f   : > { %p2872_p9 = pnand %p2870_p7, %p3594_p8 }
  0x71   : > { %p2873_p4 = pneg %p2872_p9 }
  0x73   : > { %p2878_p3 = pnand %p2876_p1, %p2873_p4 }
  0x75   : > { %2881 = shalt.err (!%p2878_p3)
}
  0x76   : > { %s2882_s24 = scalar_lea.vmem %s486_s25, 256  ;;  %p2890_p13 = scmp.lt.s32.totalorder %s486_s25, %s486_s25 }
  0x77   : > { %p2883_p10 = scmp.ne.s32.totalorder %s486_s25, %s2882_s24  ;;  %p2891_p0 = scmp.lt.s32.totalorder %s2882_s24, %s2882_s24 }
  0x79   : > { %p2885_p11 = pnand %p2883_p10, %p3594_p8  ;;  %p2892_p2 = por %p2891_p0, %p2890_p13 }
  0x7b   : > { %p2886_p12 = pneg %p2885_p11 }
  0x7d   : > { %p2893_p5 = pnand %p2892_p2, %p2886_p12 }
  0x7f   : > { %2896 = shalt.err (!%p2893_p5)
}
  0x80   : > { %2502 = dma.hbm_to_vmem [thread:$0]  (!%p3578_p6), %s4355_s7, 256, %s486_s25, [#allocation17], %s3426_s18, %s3426_s18, %s3427_s19  }
  0x81   : > { %s2897_s27 = scalar_lea.hbm %s4357_s9, 16 }
  0x82   : > { %p2898_p7 = scmp.ne.s32.totalorder %s4357_s9, %s2897_s27  ;;  %p2904_p1 = scmp.lt.u32.totalorder %s2897_s27, %s4357_s9 }
  0x84   : > { %p2900_p9 = pnand %p2898_p7, %p3594_p8 }
  0x86   : > { %p2901_p4 = pneg %p2900_p9 }
  0x88   : > { %p2906_p3 = pnand %p2904_p1, %p2901_p4 }
  0x8a   : > { %2909 = shalt.err (!%p2906_p3)
}
  0x8b   : > { %s2910_s1 = scalar_lea.vmem %s511_s17, 16  ;;  %s2917_s25 = scalar_lea.vmem %s511_s17, 32 }
  0x8c   : > { %p2911_p10 = scmp.ne.s32.totalorder %s511_s17, %s2910_s1  ;;  %p2918_p13 = scmp.lt.s32.totalorder %s511_s17, %s511_s17 }
  0x8d   : > { %p2919_p0 = scmp.lt.s32.totalorder %s2917_s25, %s2910_s1 }
  0x8e   : > { %p2913_p11 = pnand %p2911_p10, %p3594_p8 }
  0x8f   : > { %p2920_p2 = por %p2919_p0, %p2918_p13 }
  0x90   : > { %p2914_p12 = pneg %p2913_p11 }
  0x92   : > { %p2921_p5 = pnand %p2920_p2, %p2914_p12 }
  0x94   : > { %2924 = shalt.err (!%p2921_p5)
}
  0x95   : > { %2508 = dma.hbm_to_vmem [thread:$0]  (!%p3578_p6), %s4357_s9, 16, %s511_s17, [#allocation20]  }
  0x96   : > { %s3430_s20 = smov [#allocation22]   ;;  %s3431_s26 = smov [#allocation25]  }
  0x97   : > { %s531_s30 = sshll.u32 %s3430_s20, 4  ;;  %s555_s27 = sshll.u32 %s3431_s26, 4  ;;  %s532_s30 = int_to_ptr.vmem [resolvable:$true] %s531_s30  ;;  %s556_s27 = int_to_ptr.vmem [resolvable:$true] %s555_s27 }
  0x98   : > { %s2925_s28 = scalar_lea.hbm %s4359_s11, 256 }
  0x99   : > { %p2926_p7 = scmp.ne.s32.totalorder %s4359_s11, %s2925_s28  ;;  %p2932_p1 = scmp.lt.u32.totalorder %s2925_s28, %s4359_s11 }
  0x9b   : > { %p2928_p9 = pnand %p2926_p7, %p3594_p8 }
  0x9d   : > { %p2929_p4 = pneg %p2928_p9 }
  0x9f   : > { %p2934_p3 = pnand %p2932_p1, %p2929_p4 }
  0xa1   : > { %2937 = shalt.err (!%p2934_p3)
}
  0xa2   : > { %s2938_s17 = scalar_lea.vmem %s532_s30, 256  ;;  %p2946_p13 = scmp.lt.s32.totalorder %s532_s30, %s532_s30 }
  0xa3   : > { %p2939_p10 = scmp.ne.s32.totalorder %s532_s30, %s2938_s17  ;;  %p2947_p0 = scmp.lt.s32.totalorder %s2938_s17, %s2938_s17 }
  0xa5   : > { %p2941_p11 = pnand %p2939_p10, %p3594_p8  ;;  %p2948_p2 = por %p2947_p0, %p2946_p13 }
  0xa7   : > { %p2942_p12 = pneg %p2941_p11 }
  0xa9   : > { %p2949_p5 = pnand %p2948_p2, %p2942_p12 }
  0xab   : > { %2952 = shalt.err (!%p2949_p5)
}
  0xac   : > { %2514 = dma.hbm_to_vmem [thread:$0]  (!%p3578_p6), %s4359_s11, 256, %s532_s30, [#allocation23], %s3426_s18, %s3426_s18, %s3427_s19  }
  0xad   : > { %s2953_s0 = scalar_lea.hbm %s4361_s13, 1024 }
  0xae   : > { %p2954_p7 = scmp.ne.s32.totalorder %s4361_s13, %s2953_s0  ;;  %p2960_p1 = scmp.lt.u32.totalorder %s2953_s0, %s4361_s13 }
  0xb0   : > { %p2956_p9 = pnand %p2954_p7, %p3594_p8 }
  0xb2   : > { %p2957_p4 = pneg %p2956_p9 }
  0xb4   : > { %p2962_p3 = pnand %p2960_p1, %p2957_p4 }
  0xb6   : > { %2965 = shalt.err (!%p2962_p3)
}
  0xb7   : > { %s2966_s24 = scalar_lea.vmem %s556_s27, 1024  ;;  %p2974_p13 = scmp.lt.s32.totalorder %s556_s27, %s556_s27 }
  0xb8   : > { %p2967_p10 = scmp.ne.s32.totalorder %s556_s27, %s2966_s24  ;;  %p2975_p0 = scmp.lt.s32.totalorder %s2966_s24, %s2966_s24 }
  0xba   : > { %p2969_p11 = pnand %p2967_p10, %p3594_p8  ;;  %p2976_p2 = por %p2975_p0, %p2974_p13 }
  0xbc   : > { %p2970_p12 = pneg %p2969_p11 }
  0xbe   : > { %p2977_p5 = pnand %p2976_p2, %p2970_p12 }
  0xc0   : > { %2980 = shalt.err (!%p2977_p5)
}
  0xc1   : > { %2520 = dma.hbm_to_vmem [thread:$0]  (!%p3578_p6), %s4361_s13, 1024, %s556_s27, [#allocation26], %s3426_s18, %s3426_s18, %s3427_s19  }
  0xc2   : > { %s3432_s3 = smov [#allocation9]   ;;  %s3433_s26 = smov [#allocation12]  }
  0xc3   : > { %s427_s20 = sshll.u32 %s3432_s3, 4  ;;  %s451_s15 = sshll.u32 %s3433_s26, 4  ;;  %s428_s20 = int_to_ptr.vmem [resolvable:$true] %s427_s20  ;;  %s452_s15 = int_to_ptr.vmem [resolvable:$true] %s451_s15 }
  0xc4   : > { %s4393_s2 = sld [smem:[#allocation46_spill]] }
  0xca   : > { %s2981_s21 = scalar_lea.hbm %s4393_s2, 16 }
  0xcb   : > { %p2982_p7 = scmp.ne.s32.totalorder %s4393_s2, %s2981_s21  ;;  %p2988_p1 = scmp.lt.u32.totalorder %s2981_s21, %s4393_s2 }
  0xcd   : > { %p2984_p9 = pnand %p2982_p7, %p3594_p8 }
  0xcf   : > { %p2985_p4 = pneg %p2984_p9 }
  0xd1   : > { %p2990_p3 = pnand %p2988_p1, %p2985_p4 }
  0xd3   : > { %2993 = shalt.err (!%p2990_p3)
}
  0xd4   : > { %s2994_s18 = scalar_lea.vmem %s428_s20, 16  ;;  %s3001_s19 = scalar_lea.vmem %s428_s20, 32 }
  0xd5   : > { %p2995_p10 = scmp.ne.s32.totalorder %s428_s20, %s2994_s18  ;;  %p3002_p13 = scmp.lt.s32.totalorder %s428_s20, %s428_s20 }
  0xd6   : > { %p3003_p0 = scmp.lt.s32.totalorder %s3001_s19, %s2994_s18 }
  0xd7   : > { %p2997_p11 = pnand %p2995_p10, %p3594_p8 }
  0xd8   : > { %p3004_p2 = por %p3003_p0, %p3002_p13 }
  0xd9   : > { %p2998_p12 = pneg %p2997_p11 }
  0xdb   : > { %p3005_p5 = pnand %p3004_p2, %p2998_p12 }
  0xdd   : > { %3008 = shalt.err (!%p3005_p5)
}
  0xde   : > { %2487 = dma.hbm_to_vmem [thread:$0]  (!%p3578_p6), %s4393_s2, 16, %s428_s20, [#allocation8]  }
  0xdf   : > { %s3009_s0 = scalar_lea.hbm %s4352_s4, 16 }
  0xe0   : > { %p3010_p7 = scmp.ne.s32.totalorder %s4352_s4, %s3009_s0  ;;  %p3016_p1 = scmp.lt.u32.totalorder %s3009_s0, %s4352_s4 }
  0xe2   : > { %p3012_p9 = pnand %p3010_p7, %p3594_p8 }
  0xe4   : > { %p3013_p4 = pneg %p3012_p9 }
  0xe6   : > { %p3018_p3 = pnand %p3016_p1, %p3013_p4 }
  0xe8   : > { %3021 = shalt.err (!%p3018_p3)
}
  0xe9   : > { %s3022_s24 = scalar_lea.vmem %s452_s15, 16  ;;  %s3029_s20 = scalar_lea.vmem %s452_s15, 32 }
  0xea   : > { %p3023_p10 = scmp.ne.s32.totalorder %s452_s15, %s3022_s24  ;;  %p3030_p13 = scmp.lt.s32.totalorder %s452_s15, %s452_s15 }
  0xeb   : > { %p3031_p0 = scmp.lt.s32.totalorder %s3029_s20, %s3022_s24 }
  0xec   : > { %p3025_p11 = pnand %p3023_p10, %p3594_p8 }
  0xed   : > { %p3032_p2 = por %p3031_p0, %p3030_p13 }
  0xee   : > { %p3026_p12 = pneg %p3025_p11 }
  0xf0   : > { %p3033_p5 = pnand %p3032_p2, %p3026_p12 }
  0xf2   : > { %3036 = shalt.err (!%p3033_p5)
}
  0xf3   : > { %2493 = dma.hbm_to_vmem [thread:$0]  (!%p3578_p6), %s4352_s4, 16, %s452_s15, [#allocation11]  }
  0xf4   : > { %s3434_s19 = smov [#allocation15]   ;;  %s3435_s17 = smov [#allocation18]  }
  0xf5   : > { %s475_s27 = sshll.u32 %s3434_s19, 4  ;;  %s499_s3 = sshll.u32 %s3435_s17, 4  ;;  %s476_s27 = int_to_ptr.vmem [resolvable:$true] %s475_s27  ;;  %s500_s3 = int_to_ptr.vmem [resolvable:$true] %s499_s3 }
  0xf6   : > { %s3037_s28 = scalar_lea.hbm %s4354_s6, 16 }
  0xf7   : > { %p3038_p7 = scmp.ne.s32.totalorder %s4354_s6, %s3037_s28  ;;  %p3044_p1 = scmp.lt.u32.totalorder %s3037_s28, %s4354_s6 }
  0xf9   : > { %p3040_p9 = pnand %p3038_p7, %p3594_p8 }
  0xfb   : > { %p3041_p4 = pneg %p3040_p9 }
  0xfd   : > { %p3046_p3 = pnand %p3044_p1, %p3041_p4 }
  0xff   : > { %3049 = shalt.err (!%p3046_p3)
}
 0x100   : > { %s3050_s15 = scalar_lea.vmem %s476_s27, 16  ;;  %s3057_s20 = scalar_lea.vmem %s476_s27, 32 }
 0x101   : > { %p3051_p10 = scmp.ne.s32.totalorder %s476_s27, %s3050_s15  ;;  %p3058_p13 = scmp.lt.s32.totalorder %s476_s27, %s476_s27 }
 0x102   : > { %p3059_p0 = scmp.lt.s32.totalorder %s3057_s20, %s3050_s15 }
 0x103   : > { %p3053_p11 = pnand %p3051_p10, %p3594_p8 }
 0x104   : > { %p3060_p2 = por %p3059_p0, %p3058_p13 }
 0x105   : > { %p3054_p12 = pneg %p3053_p11 }
 0x107   : > { %p3061_p5 = pnand %p3060_p2, %p3054_p12 }
 0x109   : > { %3064 = shalt.err (!%p3061_p5)
}
 0x10a   : > { %2499 = dma.hbm_to_vmem [thread:$0]  (!%p3578_p6), %s4354_s6, 16, %s476_s27, [#allocation14]  }
 0x10b   : > { %s3065_s26 = scalar_lea.hbm %s4356_s8, 16 }
 0x10c   : > { %p3066_p7 = scmp.ne.s32.totalorder %s4356_s8, %s3065_s26  ;;  %p3072_p1 = scmp.lt.u32.totalorder %s3065_s26, %s4356_s8 }
 0x10e   : > { %p3068_p9 = pnand %p3066_p7, %p3594_p8 }
 0x110   : > { %p3069_p4 = pneg %p3068_p9 }
 0x112   : > { %p3074_p3 = pnand %p3072_p1, %p3069_p4 }
 0x114   : > { %3077 = shalt.err (!%p3074_p3)
}
 0x115   : > { %s3078_s25 = scalar_lea.vmem %s500_s3, 16  ;;  %s3085_s27 = scalar_lea.vmem %s500_s3, 32 }
 0x116   : > { %p3079_p10 = scmp.ne.s32.totalorder %s500_s3, %s3078_s25  ;;  %p3086_p13 = scmp.lt.s32.totalorder %s500_s3, %s500_s3 }
 0x117   : > { %p3087_p0 = scmp.lt.s32.totalorder %s3085_s27, %s3078_s25 }
 0x118   : > { %p3081_p11 = pnand %p3079_p10, %p3594_p8 }
 0x119   : > { %p3088_p2 = por %p3087_p0, %p3086_p13 }
 0x11a   : > { %p3082_p12 = pneg %p3081_p11 }
 0x11c   : > { %p3089_p5 = pnand %p3088_p2, %p3082_p12 }
 0x11e   : > { %3092 = shalt.err (!%p3089_p5)
}
 0x11f   : > { %2505 = dma.hbm_to_vmem [thread:$0]  (!%p3578_p6), %s4356_s8, 16, %s500_s3, [#allocation17]  }
 0x120   : > { %s3436_s20 = smov [#allocation21]   ;;  %s3437_s18 = smov [#allocation24]  }
 0x121   : > { %s521_s30 = sshll.u32 %s3436_s20, 4  ;;  %s545_s19 = sshll.u32 %s3437_s18, 4  ;;  %s522_s30 = int_to_ptr.vmem [resolvable:$true] %s521_s30  ;;  %s546_s19 = int_to_ptr.vmem [resolvable:$true] %s545_s19 }
 0x122   : > { %s3093_s0 = scalar_lea.hbm %s4358_s10, 16 }
 0x123   : > { %p3094_p7 = scmp.ne.s32.totalorder %s4358_s10, %s3093_s0  ;;  %p3100_p1 = scmp.lt.u32.totalorder %s3093_s0, %s4358_s10 }
 0x125   : > { %p3096_p9 = pnand %p3094_p7, %p3594_p8 }
 0x127   : > { %p3097_p4 = pneg %p3096_p9 }
 0x129   : > { %p3102_p3 = pnand %p3100_p1, %p3097_p4 }
 0x12b   : > { %3105 = shalt.err (!%p3102_p3)
}
 0x12c   : > { %s3106_s3 = scalar_lea.vmem %s522_s30, 16  ;;  %s3113_s27 = scalar_lea.vmem %s522_s30, 32 }
 0x12d   : > { %p3107_p10 = scmp.ne.s32.totalorder %s522_s30, %s3106_s3  ;;  %p3114_p13 = scmp.lt.s32.totalorder %s522_s30, %s522_s30 }
 0x12e   : > { %p3115_p0 = scmp.lt.s32.totalorder %s3113_s27, %s3106_s3 }
 0x12f   : > { %p3109_p11 = pnand %p3107_p10, %p3594_p8 }
 0x130   : > { %p3116_p2 = por %p3115_p0, %p3114_p13 }
 0x131   : > { %p3110_p12 = pneg %p3109_p11 }
 0x133   : > { %p3117_p5 = pnand %p3116_p2, %p3110_p12 }
 0x135   : > { %3120 = shalt.err (!%p3117_p5)
}
 0x136   : > { %2511 = dma.hbm_to_vmem [thread:$0]  (!%p3578_p6), %s4358_s10, 16, %s522_s30, [#allocation20]  }
 0x137   : > { %s3121_s17 = scalar_lea.hbm %s4360_s12, 16 }
 0x138   : > { %p3122_p7 = scmp.ne.s32.totalorder %s4360_s12, %s3121_s17  ;;  %p3128_p1 = scmp.lt.u32.totalorder %s3121_s17, %s4360_s12 }
 0x13a   : > { %p3124_p9 = pnand %p3122_p7, %p3594_p8 }
 0x13c   : > { %p3125_p4 = pneg %p3124_p9 }
 0x13e   : > { %p3130_p3 = pnand %p3128_p1, %p3125_p4 }
 0x140   : > { %3133 = shalt.err (!%p3130_p3)
}
 0x141   : > { %s3134_s1 = scalar_lea.vmem %s546_s19, 16  ;;  %s3141_s30 = scalar_lea.vmem %s546_s19, 32 }
 0x142   : > { %p3135_p10 = scmp.ne.s32.totalorder %s546_s19, %s3134_s1  ;;  %p3142_p13 = scmp.lt.s32.totalorder %s546_s19, %s546_s19 }
 0x143   : > { %p3143_p0 = scmp.lt.s32.totalorder %s3141_s30, %s3134_s1 }
 0x144   : > { %p3137_p11 = pnand %p3135_p10, %p3594_p8 }
 0x145   : > { %p3144_p2 = por %p3143_p0, %p3142_p13 }
 0x146   : > { %p3138_p12 = pneg %p3137_p11 }
 0x148   : > { %p3145_p5 = pnand %p3144_p2, %p3138_p12 }
 0x14a   : > { %3148 = shalt.err (!%p3145_p5)
}
 0x14b   : > { %2517 = dma.hbm_to_vmem [thread:$0]  (!%p3578_p6), %s4360_s12, 16, %s546_s19, [#allocation23]  }
 0x14c   : > { %s3438_s27 = smov [#allocation27]   ;;  %s3149_s18 = scalar_lea.hbm %s4362_s14, 16 }
 0x14d   : > { %s569_s24 = sshll.u32 %s3438_s27, 4  ;;  %p3150_p7 = scmp.ne.s32.totalorder %s4362_s14, %s3149_s18  ;;  %s570_s24 = int_to_ptr.vmem [resolvable:$true] %s569_s24 }
 0x14e   : > { %p3156_p1 = scmp.lt.u32.totalorder %s3149_s18, %s4362_s14 }
 0x14f   : > { %p3152_p9 = pnand %p3150_p7, %p3594_p8 }
 0x151   : > { %p3153_p4 = pneg %p3152_p9 }
 0x153   : > { %p3158_p3 = pnand %p3156_p1, %p3153_p4 }
 0x155   : > { %3161 = shalt.err (!%p3158_p3)
}
 0x156   : > { %s3162_s19 = scalar_lea.vmem %s570_s24, 16  ;;  %s3169_s21 = scalar_lea.vmem %s570_s24, 32 }
 0x157   : > { %p3163_p10 = scmp.ne.s32.totalorder %s570_s24, %s3162_s19  ;;  %p3170_p13 = scmp.lt.s32.totalorder %s570_s24, %s570_s24 }
 0x158   : > { %p3171_p0 = scmp.lt.s32.totalorder %s3169_s21, %s3162_s19 }
 0x159   : > { %p3165_p11 = pnand %p3163_p10, %p3594_p8 }
 0x15a   : > { %p3172_p2 = por %p3171_p0, %p3170_p13 }
 0x15b   : > { %p3166_p12 = pneg %p3165_p11 }
 0x15d   : > { %p3173_p5 = pnand %p3172_p2, %p3166_p12 }
 0x15f   : > { %3176 = shalt.err (!%p3173_p5)
}
 0x160   : > { %s4394_s25 = sld [smem:[#allocation40_spill]]  ;;  %s4395_s3 = sld [smem:[#allocation39_spill]] }
 0x161   : > { %s4396_s29 = sld [smem:[#allocation38_spill]]  ;;  %s4397_s27 = sld [smem:[#allocation42_spill]] }
 0x162   : > { %2523 = dma.hbm_to_vmem [thread:$0]  (!%p3578_p6), %s4362_s14, 16, %s570_s24, [#allocation26]  }
 0x163   : > { %s2171_s15 = sadd.s32 4294967294, %s3369_s23   ;;  %s50_s20 = sadd.s32 1, %s3365_s22 }
 0x164   : > { %p52_p8 = scmp.ge.s32.totalorder %s50_s20, 2  ;;  %p65_p9 = scmp.eq.s32.totalorder %s3369_s23, 0 }
 0x165   : > { %s4399_s17 = sadd.s32 4294967295, %s3369_s23   ;;  %p396_p13 = scmp.eq.s32.totalorder %s2171_s15, 1 }
 0x166   : > { %s57_s16 = sadd.s32 1, %s4394_s25  ;;  %p64_p7 = scmp.ne.s32.totalorder %s4394_s25, %s4395_s3 }
 0x167   : > { %s4438_s20 = smov (%p52_p8, %s50_s20), 0  ;;  %p70_p1 = scmp.ne.s32.totalorder %s4395_s3, %s4396_s29 }
 0x168   : > { %p3873_p4 = por %p65_p9, %p64_p7  ;;  %s54_s24 = ssub.s32 %s3365_s22, %s4438_s20 }
 0x169   : > { %p390_p6 = scmp.eq.s32.totalorder %s4399_s17, 1  ;;  %p55_p3 = scmp.eq.s32.totalorder %s54_s24, 0 }
 0x16a   : > { %p4400_p10 = scmp.ne.s32.totalorder %s4397_s27, 0  ;;  %p3896_p0 = por %p396_p13, %p70_p1 }
 0x16b   : > { %p3889_p12 = por %p390_p6, %p64_p7  ;;  %p2546_p2 = scmp.lt.s32.totalorder %s3369_s23, 2 }
 0x16c   : > { %p3885_p11 = por %p4400_p10, %p70_p1  ;;  %s580_s21 = sand.u32 1, %s4394_s25  }
 0x16d   : > { %s4402_s0 = scalar_select %p3889_p12, 1, 0 }
 0x16e   : > { %s3894_s28 = scalar_select %p55_p3, %s4394_s25, %s57_s16  }
 0x16f   : > { %s4403_s19 = scalar_select %p3896_p0, 1, 0 }
 0x170   : > { %s2189_s1 = sshll.u32 %s3365_s22, 7  ;;  %s2188_s30 = sshll.u32 %s580_s21, 3 }
 0x171   : > { %s4404_s27 = sld [smem:[#allocation44_spill]]  ;;  %s584_s15 = scalar_lea.vmem [#allocation4], %s2188_s30 }
 0x172   : > { %s591_s16 = sshll.u32 %s584_s15, 4  ;;  %p3910_p5 = pnand %p2546_p2, %p3873_p4  ;;  %s3914_s16 = int_to_ptr.vmem [resolvable:$true] %s591_s16 }
 0x173   : > { %s581_s25 = scalar_lea.sflag [#allocation5], %s580_s21 }
 0x174   : > { %p3179_p7 = pneg %p3910_p5 }
 0x177   : > { %s3906_s24 = scalar_lea.hbm %s4404_s27, %s2189_s1  ;;  %s3182_s18 = scalar_lea.hbm %s4404_s27, 256 }
 0x178   : > { %s3177_s2 = scalar_lea.hbm %s3906_s24, 128  ;;  %p3183_p4 = scmp.lt.u32.totalorder %s3906_s24, %s4404_s27 }
 0x179   : > { %p3178_p8 = scmp.ne.s32.totalorder %s3906_s24, %s3177_s2  ;;  %p3184_p6 = scmp.lt.u32.totalorder %s3182_s18, %s3177_s2 }
 0x17a   : > { %p3186_p10 = scmp.lt.u32.totalorder %s3177_s2, %s3906_s24 }
 0x17b   : > { %p3180_p9 = pnand %p3179_p7, %p3178_p8  ;;  %p3185_p3 = por %p3184_p6, %p3183_p4 }
 0x17d   : > { %p3181_p1 = pneg %p3180_p9  ;;  %p3187_p13 = por %p3186_p10, %p3185_p3 }
 0x17f   : > { %p3188_p2 = pnand %p3187_p13, %p3181_p1 }
 0x181   : > { %3191 = shalt.err (!%p3188_p2)
}
 0x182   : > { %s3192_s21 = scalar_lea.vmem %s3914_s16, 128  ;;  %s3439_s15 = smov [#allocation4]  }
 0x183   : > { %p3193_p8 = scmp.ne.s32.totalorder %s3914_s16, %s3192_s21  ;;  %s3197_s1 = sshll.u32 %s3439_s15, 4  ;;  %s3198_s1 = int_to_ptr.vmem [resolvable:$false] %s3197_s1 }
 0x184   : > { %s3199_s30 = scalar_lea.vmem %s3198_s1, 256  ;;  %p3200_p12 = scmp.lt.s32.totalorder %s3914_s16, %s3198_s1 }
 0x185   : > { %p3195_p9 = pnand %p3193_p8, %p3179_p7  ;;  %p3201_p4 = scmp.lt.s32.totalorder %s3199_s30, %s3192_s21 }
 0x187   : > { %p3196_p0 = pneg %p3195_p9  ;;  %p3202_p6 = por %p3201_p4, %p3200_p12 }
 0x189   : > { %p3203_p3 = pnand %p3202_p6, %p3196_p0 }
 0x18b   : > { %3206 = shalt.err (!%p3203_p3)
}
 0x18c   : > { %2527 = dma.hbm_to_vmem [thread:$0]  (!%p3910_p5), %s3906_s24, 128, %s3914_s16, %s581_s25  }
 0x18d   : > { %s4406_s2 = sld [smem:[#allocation43_spill]] }
 0x193   : > { %p4407_p1 = scmp.ne.s32.totalorder %s4406_s2, 0 }
 0x194   : > { %s4408_s18 = sld [smem:[#allocation39_spill]] (!%p4407_p1) }
 0x195   : > { %600 = sbr.rel (%p4407_p1) target bundleno = 2844 (0xb1c), region = 80 }
 0x19a   : > { %s3944_s3 = sand.u32 (!%p4407_p1), 1, %s4408_s18  }
 0x19b   : > { %s2191_s29 = sshll.u32 (!%p4407_p1), %s3944_s3, 3  ;;  %s603_s21 = scalar_lea.sflag (!%p4407_p1), [#allocation5], %s3944_s3 }
 0x19c   : > { %s606_s15 = scalar_lea.vmem [#allocation4], %s2191_s29 }
 0x19d   : > { %3312 = dma.done.wait (%p3885_p11), %s603_s21, 128  }
 0x19e   : > { %3314 = vsyncadd (%p3885_p11), %s603_s21, 4294967168  ;;  %s4409_s24 = sld [smem:[#allocation42_spill]] }
 0x1a4   : > { %p4410_p12 = scmp.ne.s32.totalorder %s4409_s24, 0 }
 0x1a6   : > { %3316 = dma.done.wait (%p4410_p12), [#allocation8], 32  }
 0x1a7   : > { %3318 = vsyncadd (%p4410_p12), [#allocation8], 4294967264 }
 0x1a8   : > { %3320 = dma.done.wait (%p4410_p12), [#allocation11], 272  }
 0x1a9   : > { %3322 = vsyncadd (%p4410_p12), [#allocation11], 4294967024 }
 0x1aa   : > { %3324 = dma.done.wait (%p4410_p12), [#allocation14], 272  }
 0x1ab   : > { %3326 = vsyncadd (%p4410_p12), [#allocation14], 4294967024 }
 0x1ac   : > { %3328 = dma.done.wait (%p4410_p12), [#allocation17], 272  }
 0x1ad   : > { %3330 = vsyncadd (%p4410_p12), [#allocation17], 4294967024 }
 0x1ae   : > { %3332 = dma.done.wait (%p4410_p12), [#allocation20], 32  }
 0x1af   : > { %3334 = vsyncadd (%p4410_p12), [#allocation20], 4294967264 }
 0x1b0   : > { %3336 = dma.done.wait (%p4410_p12), [#allocation23], 272  }
 0x1b1   : > { %3338 = vsyncadd (%p4410_p12), [#allocation23], 4294967024 }
 0x1b2   : > { %3340 = dma.done.wait (%p4410_p12), [#allocation26], 1040  }
 0x1b3   : > { %3342 = vsyncadd (%p4410_p12), [#allocation26], 4294966256  ;;  %vm718_vm0 = vcmask 261120   ;;  %v3982_v0 = vld [vmem:[%s606_s15] sm:$0xff]  ;;  %v734_v12 = vlaneseq  ;;  %v2741_v14 = vld [vmem:[#allocation10] sm:$0xff]   ;;  %v3440_v15 = vmov 0.0  }
 0x1b4   : > { %v719_v1 = vsel %vm718_vm0, %v3982_v0, 0.0  ;;  %v2739_v13 = vld [vmem:[#allocation13] sm:$0xff]   ;;  %2305 = vmatprep.subr.bf16.mxu0 %v3440_v15  ;;  %2313 = vmatprep.subr.bf16.mxu1 %v3440_v15  ;;  %v2740_v17 = vld [vmem:[#allocation13 + $0x8] sm:$0xff]   ;;  %vm3441_vm1 = vmmov 0   ;;  %v2742_v18 = vld [vmem:[#allocation10 + $0x8] sm:$0xff]   ;;  %vm828_vm2 = vcmask 60416  }
 0x1b5   : > { %720 = vadd.xlane.f32.xlu0 %v719_v1  ;;  %v3993_v16 = vshrl.u32 %v734_v12, 7  ;;  %2306 = vmatpush3.bf16.msra.mxu0 %v2739_v13  ;;  %v2261_v26 = vld [vmem:[#allocation7] ss:$0 sm:$0xff]  ;;  %v2262_v28 = vld [vmem:[#allocation9] ss:$0 sm:$0xff]  ;;  %s3442_s26 = smov 112  }
 0x1b6   : > { %2314 = vmatpush3.bf16.msra.mxu1 %v2741_v14  ;;  %2307 = vmatprep.subr.bf16.mxu0 %v3440_v15  ;;  %v2207_v37 = vld [vmem:[#allocation15] ss:$0 sm:$0xff]  ;;  %v2215_v42 = vld [vmem:[#allocation12] ss:$0 sm:$0xff]  ;;  %s3443_s16 = smov 120   ;;  %s3444_s17 = smov 104  }
 0x1b7   : > { %2309 = vmatprep.mubr.msk.bf16.mxu0 %vm3441_vm1, %v3440_v15  ;;  %2315 = vmatprep.subr.bf16.mxu1 %v3440_v15  ;;  %s3445_s25 = smov 96   ;;  %v4011_v52 = vand.u32 127, %v734_v12  ;;  %s4037_s1 = scalar_lea.vmem [#allocation28], %s2191_s29  ;;  %v4051_v12 = vmov 0.0   ;;  %v4053_v13 = vmov 0.0   ;;  %v4055_v14 = vmov -inf  }
 0x1b8   : > { %2317 = vmatprep.mubr.msk.bf16.mxu1 %vm3441_vm1, %v3440_v15  ;;  %s4063_s30 = smov 0  }
 0x1b9   : > { %865 = vadd.xlane.f32.xlu0 %v719_v1  ;;  %2308 = vmatpush3.bf16.msra.mxu0 %v2740_v17  ;;  %v4057_v17 = vmov -inf  }
 0x1ba   : > { %2316 = vmatpush3.bf16.msra.mxu1 %v2742_v18  ;;  %v4059_v18 = vmov -inf  }
 0x242   : > { %v721_v2 = vpop.xlane.xlu0 %720 }
 0x243   : > { %v723_v3 = vmul.f32 0.03125, %v721_v2 }
 0x245   : > { %v724_v4 = vsub.f32 %v3982_v0, %v723_v3 }
 0x246   : > { %v866_v5 = vpop.xlane.xlu0 %865 }
 0x247   : > { %v868_v6 = vmul.f32 0.03125, %v866_v5  ;;  %v725_v7 = vmul.f32 %v724_v4, %v724_v4 }
 0x249   : > { %v869_v8 = vsub.f32 %v3982_v0, %v868_v6  ;;  %v726_v9 = vsel %vm718_vm0, %v725_v7, 0.0  ;;  %v4039_v6 = vmov 0.0   ;;  %v4041_v7 = vmov 0.0  }
 0x24a   : > { %727 = vadd.xlane.f32.xlu1 %v726_v9  ;;  %v4045_v9 = vmov 0.0  }
 0x24b   : > { %v870_v10 = vmul.f32 %v869_v8, %v869_v8 }
 0x24d   : > { %v871_v11 = vsel %vm718_vm0, %v870_v10, 0.0  ;;  %v4047_v10 = vmov 0.0  }
 0x24e   : > { %872 = vadd.xlane.f32.xlu1 %v871_v11  ;;  %v4049_v11 = vmov 0.0  }
 0x2d7   : > { %v728_v19 = vpop.xlane.xlu1 %727 }
 0x2d8   : > { %v729_v20 = vmul.f32 0.03125, %v728_v19  ;;  %v4061_v19 = vmov -inf  }
 0x2da   : > { %v730_v21 = vadd.f32 1e-05, %v729_v20 }
 0x2db   : > { %v873_v22 = vpop.xlane.xlu1 %872 }
 0x2dc   : > { %2743 = vrsqrt.f32 %v730_v21  ;;  %v874_v23 = vmul.f32 0.03125, %v873_v22 }
 0x2de   : > { %v875_v24 = vadd.f32 1e-05, %v874_v23 }
 0x2e0   : > { %2745 = vrsqrt.f32 %v875_v24 }
 0x2e6   : > { %v2744_v25 = vpop.eup %2743 }
 0x2e7   : > { %v732_v27 = vmul.f32 %v2744_v25, %v724_v4 }
 0x2e9   : > { %v739_v29 = vmul.f32 %v2261_v26, %v732_v27 }
 0x2ea   : > { %v2746_v30 = vpop.eup %2745 }
 0x2eb   : > { %v746_v31 = vadd.f32 %v2262_v28, %v739_v29  ;;  %v877_v32 = vmul.f32 %v2746_v30, %v869_v8  ;;  %v4043_v8 = vmov 0.0  }
 0x2ed   : > { %v747_v33 = vpack.c.bf16 %v746_v31, %v746_v31  ;;  %v884_v34 = vmul.f32 %v2261_v26, %v877_v32 }
 0x2ef   : > { %2310 = vmatmul.mubr.msk.bf16.vlgmr.msra.gmra.mrb[0].mxu0 %vm718_vm0, %v747_v33  ;;  %v891_v35 = vadd.f32 %v2262_v28, %v884_v34 }
 0x2f1   : > { %v892_v36 = vpack.c.bf16 %v891_v35, %v891_v35 }
 0x2f3   : > { %2318 = vmatmul.mubr.msk.bf16.vlgmr.msra.gmra.mrb[0].mxu1 %vm718_vm0, %v892_v36 }
 0x3c2   : > { %v808_v38 = vpop.f32.mrb[0].mxu0 }
 0x3c3   : > { %v809_v39 = vadd.f32 %v2207_v37, %v808_v38  ;;  %v2311_v40 = vpop.f32.mrb[1].mxu0 }
 0x3c4   : > { %v811_v41 = vpop.f32.mrb[2].mxu0 }
 0x3c5   : > { %818 = vrot.lane.b32.xlu1 %v809_v39, %s3442_s26  ;;  %815 = vrot.lane.b32.xlu0 %v809_v39, %s3443_s16  ;;  %v2312_v43 = vpop.f32.mrb[3].mxu0  ;;  %v824_v44 = vpack.c.bf16 %v809_v39, %v809_v39 }
 0x3c6   : > { %v953_v45 = vpop.f32.mrb[0].mxu1 }
 0x3c7   : > { %v954_v46 = vadd.f32 %v2215_v42, %v953_v45  ;;  %v2319_v47 = vpop.f32.mrb[1].mxu1  ;;  %829 = vst.msk [vmem:[#allocation2] sm:$0xf] %vm828_vm2, %v824_v44 }
 0x3c8   : > { %v956_v48 = vpop.f32.mrb[2].mxu1 }
 0x3c9   : > { %v4005_v49 = vmul.f32 0.35355338, %v954_v46  ;;  %v2320_v50 = vpop.f32.mrb[3].mxu1  ;;  %821 = vrot.lane.b32.xlu1 %v809_v39, %s3444_s17 }
 0x3cb   : > { %v970_v51 = vpack.c.bf16 %v4005_v49, %v4005_v49 }
 0x3cd   : > { %845 = vrot.lane.b32.xlu1 %v824_v44, %s3445_s25 }
 0x3d1   : > { %961 = vrot.lane.b32.xlu1 %v4005_v49, %s3443_s16 }
 0x437   : > { %v819_v53 = vpop.permute.xlu1 %818  ;;  %v816_v54 = vpop.permute.xlu0 %815 }
 0x438   : > { %v826_v55 = vpack.c.bf16 %v819_v53, %v819_v53  ;;  %v825_v56 = vpack.c.bf16 %v816_v54, %v816_v54 }
 0x43a   : > { %831 = vst.msk [vmem:[#allocation2 + $0x8] sm:$0xf] %vm828_vm2, %v826_v55  ;;  %830 = vst.msk [vmem:[#allocation2 + $0x4] sm:$0xf] %vm828_vm2, %v825_v56  ;;  %847 = vrot.lane.b32.xlu0 %v825_v56, %s3445_s25  ;;  %849 = vrot.lane.b32.xlu1 %v826_v55, %s3445_s25 }
 0x43b   : > { %v822_v57 = vpop.permute.xlu1 %821 }
 0x43c   : > { %v827_v58 = vpack.c.bf16 %v822_v57, %v822_v57 }
 0x43e   : > { %832 = vst.msk [vmem:[#allocation2 + $0xc] sm:$0xf] %vm828_vm2, %v827_v58  ;;  %851 = vrot.lane.b32.xlu0 %v827_v58, %s3445_s25  ;;  %967 = vrot.lane.b32.xlu1 %v4005_v49, %s3444_s17 }
 0x43f   : > { %v846_v59 = vpop.permute.xlu1 %845 }
 0x440   : > { %857 = vst.msk [vmem:[#allocation3] sm:$0xf] %vm828_vm2, %v846_v59 }
 0x442   : > { %964 = vrot.lane.b32.xlu0 %v4005_v49, %s3442_s26 }
 0x443   : > { %v4020_v60 = vpop.permute.xlu1 %961 }
 0x444   : > { %v971_v61 = vpack.c.bf16 %v4020_v60, %v4020_v60 }
 0x4ac   : > { %v848_v62 = vpop.permute.xlu0 %847  ;;  %v850_v63 = vpop.permute.xlu1 %849 }
 0x4ad   : > { %858 = vst.msk [vmem:[#allocation3 + $0x4] sm:$0xf] %vm828_vm2, %v848_v62  ;;  %859 = vst.msk [vmem:[#allocation3 + $0x8] sm:$0xf] %vm828_vm2, %v850_v63 }
 0x4b0   : > { %v852_v1 = vpop.permute.xlu0 %851  ;;  %v4026_v2 = vpop.permute.xlu1 %967 }
 0x4b1   : > { %860 = vst.msk [vmem:[#allocation3 + $0xc] sm:$0xf] %vm828_vm2, %v852_v1  ;;  %v973_v3 = vpack.c.bf16 %v4026_v2, %v4026_v2 }
 0x4b4   : > { %v4031_v4 = vpop.permute.xlu0 %964 }
 0x4b5   : > { %v972_v5 = vpack.c.bf16 %v4031_v4, %v4031_v4 }
 0x4b6 LB: >> { %v3446_v20 = vmov 0.0   ;;  %s2259_s2 = sshll.u32 %s3421_s30, 4  ;;  %vm1017_vm3 = vcmask 64512   ;;  %vm3447_vm4 = vmmov 0   ;;  %s2222_s29 = sshll.u32 %s3421_s30, 3  ;;  %v3448_v31 = vmov -10000.0   ;;  %s3421_s30 = sphi %s4063_s30, %s984_s30   ;;  %v3417_v19 = vphi %v4061_v19, %v4424_v19   ;;  %v3413_v18 = vphi %v4059_v18, %v4423_v18   ;;  %v3409_v17 = vphi %v4057_v17, %v4422_v17   ;;  %v3405_v14 = vphi %v4055_v14, %v4421_v14   ;;  %v3401_v13 = vphi %v4053_v13, %v4420_v13   ;;  %v3397_v12 = vphi %v4051_v12, %v4419_v12   ;;  %v3393_v11 = vphi %v4049_v11, %v4418_v11   ;;  %v3389_v10 = vphi %v4047_v10, %v4417_v10   ;;  %v3385_v9 = vphi %v4045_v9, %v4416_v9   ;;  %v3381_v8 = vphi %v4043_v8, %v4415_v8   ;;  %v3377_v7 = vphi %v4041_v7, %v4414_v7   ;;  %v3373_v6 = vphi %v4039_v6, %v4413_v6  }
 0x4b7   : >> { %2321 = vmatprep.subr.bf16.mxu0 %v3446_v20  ;;  %2327 = vmatprep.subr.bf16.mxu1 %v3446_v20  ;;  %s1001_s18 = scalar_lea.vmem [#allocation2], %s2259_s2  ;;  %v1013_v29 = vstv %s2222_s29  ;;  %s1007_s21 = scalar_lea.vmem [#allocation3], %s2259_s2  ;;  %vm1273_vm6 = vcmask 1043456  }
 0x4b8   : >> { %2323 = vmatprep.mubr.msk.bf16.mxu0 %vm3447_vm4, %v3446_v20  ;;  %2329 = vmatprep.mubr.msk.bf16.mxu1 %vm3447_vm4, %v3446_v20  ;;  %v1002_v21 = vld [vmem:[%s1001_s18] sm:$0xf]  ;;  %v1003_v22 = vld [vmem:[%s1001_s18 + $0x4] sm:$0xf]  ;;  %v1004_v25 = vld [vmem:[%s1001_s18 + $0x8] sm:$0xf]  ;;  %v1014_v30 = vadd.s32 %v1013_v29, %v4011_v52 }
 0x4b9   : >> { %v1022_v23 = vsel %vm1017_vm3, %v1002_v21, 0  ;;  %v1068_v24 = vsel %vm1017_vm3, %v1003_v22, 0  ;;  %v1005_v26 = vld [vmem:[%s1001_s18 + $0xc] sm:$0xf]  ;;  %v1114_v27 = vsel %vm1017_vm3, %v1004_v25, 0  ;;  %s984_s30 = sadd.s32 1, %s3421_s30  }
 0x4ba   : >> { %2322 = vmatpush3.bf16.xpose.msra.mxu0 %v1022_v23  ;;  %2328 = vmatpush3.bf16.xpose.msra.mxu1 %v1068_v24  ;;  %v1160_v28 = vsel %vm1017_vm3, %v1005_v26, 0  ;;  %vm1015_vm5 = vcmp.le.s32.totalorder %v1014_v30, %v3993_v16  ;;  %v1008_v62 = vld [vmem:[%s1007_s21] sm:$0xf]  ;;  %v1009_v1 = vld [vmem:[%s1007_s21 + $0x4] sm:$0xf]  ;;  %p4207_p11 = scmp.ge.s32.totalorder %s984_s30, 1 }
 0x4bb   : >> { %2333 = vmatprep.subr.bf16.mxu0 %v3446_v20  ;;  %2339 = vmatprep.subr.bf16.mxu1 %v3446_v20  ;;  %v1016_v32 = vsel %vm1015_vm5, 0.0, %v3448_v31  ;;  %v1275_v63 = vsel %vm1273_vm6, %v1008_v62, 0  ;;  %v1321_v21 = vsel %vm1273_vm6, %v1009_v1, 0  ;;  %v1010_v22 = vld [vmem:[%s1007_s21 + $0x8] sm:$0xf]  ;;  %s4425_s24 = sld [smem:[#allocation41_spill]] (%p4207_p11) }
 0x4bc   : >> { %v1367_v23 = vsel %vm1273_vm6, %v1010_v22, 0  ;;  %v1011_v24 = vld [vmem:[%s1007_s21 + $0xc] sm:$0xf]  ;;  %v1472_v49 = vld [vmem:[#allocation16 + $0x4] sm:$0xf] (%p4207_p11)  ;;  %s1911_s16 = sshll.u32 (%p4207_p11), %s4037_s1, 4  ;;  %s4299_s16 = int_to_ptr.vmem [resolvable:$true] %s1911_s16 }
 0x4bd   : >> { %v1413_v25 = vsel %vm1273_vm6, %v1011_v24, 0  ;;  %v1527_v2 = vsel (%p4207_p11), %vm1273_vm6, %v1472_v49, 0  ;;  %v2769_v49 = vld [vmem:[#allocation25 + $0x20] sm:$0xff] (%p4207_p11)   ;;  %s4426_s30 = sld [smem:[#allocation48_spill]] (%p4207_p11)  ;;  %s1897_s18 = scalar_lea.sflag (%p4207_p11), [#allocation6], %s3944_s3 }
 0x4be   : > { %s3207_s29 = scalar_lea.vmem (%p4207_p11), %s4299_s16, 128  ;;  %p4427_p5 = scmp.ne.s32.totalorder (%p4207_p11), %s4402_s0, 0 }
 0x4bf   : > { %p3208_p0 = scmp.ne.s32.totalorder (%p4207_p11), %s4299_s16, %s3207_s29  ;;  %s3449_s21 = smov (%p4207_p11), [#allocation28]  }
 0x4c0   : > { %s3211_s15 = sshll.u32 (%p4207_p11), %s3449_s21, 4  ;;  %s3212_s15 = int_to_ptr.vmem [resolvable:$false] %s3211_s15 }
 0x4c1   : >> { %2324 = vmatmul.mubr.msk.bf16.vlgmr.msra.gmra.mrb[0].mxu0 %vm1017_vm3, %v970_v51  ;;  %2330 = vmatmul.mubr.msk.bf16.vlgmr.msra.gmra.mrb[0].mxu1 %vm1017_vm3, %v971_v61  ;;  %s2252_s26 = sshll.u32 (%p4207_p11), %s4425_s24, 7  ;;  %p3209_p7 = pnand (%p4207_p11), %p3208_p0, %p4427_p5 }
 0x4c2   : >> { %2334 = vmatpush3.bf16.xpose.msra.mxu0 %v1114_v27  ;;  %2340 = vmatpush3.bf16.xpose.msra.mxu1 %v1160_v28  ;;  %s3213_s24 = scalar_lea.vmem (%p4207_p11), %s3212_s15, 256  ;;  %p3214_p13 = scmp.lt.s32.totalorder (%p4207_p11), %s4299_s16, %s3212_s15 }
 0x4c3   : >> { %2335 = vmatprep.mubr.msk.bf16.mxu0 %vm3447_vm4, %v3446_v20  ;;  %2341 = vmatprep.mubr.msk.bf16.mxu1 %vm3447_vm4, %v3446_v20  ;;  %s4297_s2 = scalar_lea.hbm (%p4207_p11), %s4426_s30, %s2252_s26  ;;  %p3210_p10 = pneg (%p4207_p11), %p3209_p7 }
 0x4c4   : >> { %2345 = vmatprep.subr.bf16.mxu0 %v3446_v20  ;;  %2351 = vmatprep.subr.bf16.mxu1 %v3446_v20  ;;  %p3215_p2 = scmp.lt.s32.totalorder (%p4207_p11), %s3213_s24, %s3207_s29 }
 0x4c6   : > { %p3216_p8 = por (%p4207_p11), %p3215_p2, %p3214_p13 }
 0x4c8   : > { %p3217_p9 = pnand (%p4207_p11), %p3216_p8, %p3210_p10 }
 0x4c9   : >> { %2336 = vmatmul.mubr.msk.bf16.vlgmr.msra.gmra.mrb[4].mxu0 %vm1017_vm3, %v972_v5  ;;  %2342 = vmatmul.mubr.msk.bf16.vlgmr.msra.gmra.mrb[4].mxu1 %vm1017_vm3, %v973_v3 }
 0x4ca   : >> { %2347 = vmatprep.mubr.msk.bf16.mxu0 %vm3447_vm4, %v3446_v20  ;;  %2353 = vmatprep.mubr.msk.bf16.mxu1 %vm3447_vm4, %v3446_v20 }
 0x4cb   : >> { %2346 = vmatpush3.bf16.msra.mxu0 %v1275_v63  ;;  %2352 = vmatpush3.bf16.msra.mxu1 %v1321_v21 }
 0x4cc   : >> { %2357 = vmatprep.subr.bf16.mxu0 %v3446_v20  ;;  %2363 = vmatprep.subr.bf16.mxu1 %v3446_v20 }
 0x594   : >> { %v1058_v33 = vpop.f32.mrb[0].mxu0  ;;  %v1104_v34 = vpop.f32.mrb[0].mxu1 }
 0x595   : >> { %v1059_v35 = vadd.f32 %v1058_v33, %v1016_v32  ;;  %v2325_v36 = vpop.f32.mrb[1].mxu0  ;;  %v1105_v37 = vadd.f32 %v1104_v34, %v1016_v32  ;;  %v2331_v38 = vpop.f32.mrb[1].mxu1 }
 0x596   : >> { %v1061_v39 = vpop.f32.mrb[2].mxu0  ;;  %v1107_v40 = vpop.f32.mrb[2].mxu1 }
 0x597   : >> { %v2326_v41 = vpop.f32.mrb[3].mxu0  ;;  %v1202_v42 = vsel %vm1017_vm3, %v1059_v35, -inf  ;;  %v2332_v43 = vpop.f32.mrb[3].mxu1  ;;  %v1205_v44 = vsel %vm1017_vm3, %v1105_v37, -inf }
 0x598   : >> { %1203 = vmax.xlane.f32.xlu0 %v1202_v42 }
 0x59c   : >> { %1206 = vmax.xlane.f32.xlu0 %v1205_v44  ;;  %v1150_v45 = vpop.f32.mrb[4].mxu0  ;;  %v1196_v46 = vpop.f32.mrb[4].mxu1 }
 0x59d   : >> { %v1151_v47 = vadd.f32 %v1150_v45, %v1016_v32  ;;  %v2337_v48 = vpop.f32.mrb[5].mxu0  ;;  %v1197_v50 = vadd.f32 %v1196_v46, %v1016_v32  ;;  %v2343_v53 = vpop.f32.mrb[5].mxu1 }
 0x59e   : >> { %v1153_v54 = vpop.f32.mrb[6].mxu0  ;;  %v1199_v55 = vpop.f32.mrb[6].mxu1 }
 0x59f   : >> { %v2338_v56 = vpop.f32.mrb[7].mxu0  ;;  %v1208_v57 = vsel %vm1017_vm3, %v1151_v47, -inf  ;;  %v2344_v58 = vpop.f32.mrb[7].mxu1  ;;  %v1211_v59 = vsel %vm1017_vm3, %v1197_v50, -inf }
 0x5a0   : >> { %1209 = vmax.xlane.f32.xlu1 %v1208_v57 }
 0x5a4   : >> { %1212 = vmax.xlane.f32.xlu1 %v1211_v59 }
 0x625   : >> { %v1204_v26 = vpop.xlane.xlu0 %1203 }
 0x626   : >> { %v4161_v27 = vmax.f32 %v3417_v19, %v1204_v26  }
 0x628   : >> { %v1218_v28 = vsub.f32 %v3417_v19, %v4161_v27  ;;  %v1230_v29 = vsub.f32 %v1059_v35, %v4161_v27 }
 0x629   : >> { %v1207_v30 = vpop.xlane.xlu0 %1206 }
 0x62a   : >> { %v1234_v31 = vmul.f32 1.442695, %v1230_v29  ;;  %v4167_v32 = vmax.f32 %v3413_v18, %v1207_v30   ;;  %v1222_v57 = vmul.f32 1.442695, %v1218_v28 }
 0x62c   : >> { %v1219_v33 = vsub.f32 %v3413_v18, %v4167_v32  ;;  %v1231_v34 = vsub.f32 %v1105_v37, %v4167_v32  ;;  %2747 = vpow2.f32 %v1234_v31 }
 0x62d   : >> { %v1210_v36 = vpop.xlane.xlu1 %1209 }
 0x62e   : >> { %v1236_v38 = vmul.f32 1.442695, %v1231_v34  ;;  %v4173_v39 = vmax.f32 %v3409_v17, %v1210_v36   ;;  %v1224_v58 = vmul.f32 1.442695, %v1219_v33 }
 0x630   : >> { %v1220_v19 = vsub.f32 %v3409_v17, %v4173_v39  ;;  %v1232_v35 = vsub.f32 %v1151_v47, %v4173_v39  ;;  %2749 = vpow2.f32 %v1236_v38 }
 0x631   : >> { %v1213_v40 = vpop.xlane.xlu1 %1212 }
 0x632   : >> { %v1238_v41 = vmul.f32 1.442695, %v1232_v35  ;;  %v4179_v42 = vmax.f32 %v3405_v14, %v1213_v40   ;;  %v1226_v59 = vmul.f32 1.442695, %v1220_v19 }
 0x634   : >> { %v1221_v18 = vsub.f32 %v3405_v14, %v4179_v42  ;;  %v1233_v37 = vsub.f32 %v1197_v50, %v4179_v42  ;;  %2751 = vpow2.f32 %v1238_v41 }
 0x636   : >> { %v1240_v43 = vmul.f32 1.442695, %v1233_v37  ;;  %v2748_v44 = vpop.eup %2747 }
 0x637   : >> { %v1246_v45 = vsel %vm1017_vm3, %v2748_v44, 0.0  ;;  %v1266_v46 = vpack.c.bf16 %v2748_v44, %v2748_v44 }
 0x638   : >> { %2753 = vpow2.f32 %v1240_v43  ;;  %1247 = vadd.xlane.f32.xlu0 %v1246_v45 }
 0x639   : >> { %2348 = vmatmul.mubr.msk.bf16.vlgmr.msra.gmra.mrb[8].mxu0 %vm1017_vm3, %v1266_v46  ;;  %2755 = vpow2.f32 %v1222_v57 }
 0x63a   : >> { %v2750_v17 = vpop.eup %2749  ;;  %2358 = vmatpush3.bf16.msra.mxu0 %v1367_v23  ;;  %2359 = vmatprep.mubr.msk.bf16.mxu0 %vm3447_vm4, %v3446_v20  ;;  %2757 = vpow2.f32 %v1224_v58 }
 0x63b   : >> { %v1249_v47 = vsel %vm1017_vm3, %v2750_v17, 0.0  ;;  %v1267_v14 = vpack.c.bf16 %v2750_v17, %v2750_v17  ;;  %2759 = vpow2.f32 %v1226_v59  ;;  %2369 = vmatprep.subr.bf16.mxu0 (%p4207_p11), %v3440_v15 }
 0x63c   : >> { %1250 = vadd.xlane.f32.xlu1 %v1249_v47 }
 0x63d   : >> { %2354 = vmatmul.mubr.msk.bf16.vlgmr.msra.gmra.mrb[8].mxu1 %vm1017_vm3, %v1267_v14 }
 0x63e   : >> { %v2752_v48 = vpop.eup %2751  ;;  %2364 = vmatpush3.bf16.msra.mxu1 %v1413_v25  ;;  %2365 = vmatprep.mubr.msk.bf16.mxu1 %vm3447_vm4, %v3446_v20  ;;  %v1228_v20 = vmul.f32 1.442695, %v1221_v18 }
 0x63f   : >> { %v1252_v50 = vsel %vm1017_vm3, %v2752_v48, 0.0  ;;  %v1268_v53 = vpack.c.bf16 %v2752_v48, %v2752_v48  ;;  %2387 = vmatprep.subr.bf16.mxu1 (%p4207_p11), %v3440_v15 }
 0x640   : >> { %1253 = vadd.xlane.f32.xlu0 %v1252_v50  ;;  %2761 = vpow2.f32 %v1228_v20 }
 0x641   : >> { %2360 = vmatmul.mubr.msk.bf16.vlgmr.msra.gmra.mrb[12].mxu0 %vm1017_vm3, %v1268_v53 }
 0x642   : >> { %v2754_v54 = vpop.eup %2753  ;;  %2371 = vmatprep.mubr.msk.bf16.mxu0 (%p4207_p11), %vm3441_vm1, %v3440_v15 }
 0x643   : >> { %v1255_v55 = vsel %vm1017_vm3, %v2754_v54, 0.0  ;;  %v1269_v56 = vpack.c.bf16 %v2754_v54, %v2754_v54  ;;  %v2756_v62 = vpop.eup %2755 }
 0x644   : >> { %1256 = vadd.xlane.f32.xlu1 %v1255_v55  ;;  %v1242_v63 = vmul.f32 %v3401_v13, %v2756_v62  ;;  %v2758_v1 = vpop.eup %2757  ;;  %v1262_v38 = vmul.f32 %v3385_v9, %v2756_v62  ;;  %v1471_v55 = vld [vmem:[#allocation16] sm:$0xf] (%p4207_p11) }
 0x645   : >> { %2366 = vmatmul.mubr.msk.bf16.vlgmr.msra.gmra.mrb[12].mxu1 %vm1017_vm3, %v1269_v56  ;;  %v1243_v23 = vmul.f32 %v3397_v12, %v2758_v1  ;;  %v2760_v24 = vpop.eup %2759  ;;  %v1263_v12 = vmul.f32 %v3381_v8, %v2758_v1 }
 0x646   : >> { %v1244_v28 = vmul.f32 %v3393_v11, %v2760_v24  ;;  %v1264_v45 = vmul.f32 %v3377_v7, %v2760_v24  ;;  %2389 = vmatprep.mubr.msk.bf16.mxu1 (%p4207_p11), %vm3441_vm1, %v3440_v15 }
 0x64a   : >> { %v2762_v29 = vpop.eup %2761 }
 0x64b   : >> { %v1245_v33 = vmul.f32 %v3389_v10, %v2762_v29  ;;  %v1265_v14 = vmul.f32 %v3373_v6, %v2762_v29 }
 0x6c5   : >> { %v1248_v21 = vpop.xlane.xlu0 %1247 }
 0x6c6   : >> { %v1258_v22 = vadd.f32 %v1248_v21, %v1242_v63  }
 0x6c8   : > { %2773 = vrcp.f32 (%p4207_p11), %v1258_v22 }
 0x6c9   : >> { %v1251_v25 = vpop.xlane.xlu1 %1250 }
 0x6ca   : >> { %v1259_v26 = vadd.f32 %v1251_v25, %v1243_v23  }
 0x6cc   : > { %2775 = vrcp.f32 (%p4207_p11), %v1259_v26 }
 0x6cd   : >> { %v1254_v30 = vpop.xlane.xlu0 %1253 }
 0x6ce   : >> { %v1260_v31 = vadd.f32 %v1254_v30, %v1244_v28  }
 0x6d1   : >> { %v1257_v34 = vpop.xlane.xlu1 %1256 }
 0x6d2   : >> { %v1261_v36 = vadd.f32 %v1257_v34, %v1245_v33   ;;  %v2774_v16 = vpop.eup (%p4207_p11), %2773 }
 0x6d4   : > { %2777 = vrcp.f32 (%p4207_p11), %v1261_v36 }
 0x6d5   : > { %2779 = vrcp.f32 (%p4207_p11), %v1260_v31 }
 0x6d6   : > { %v2776_v51 = vpop.eup (%p4207_p11), %2775 }
 0x6de   : > { %v2778_v60 = vpop.eup (%p4207_p11), %2777 }
 0x70c   : >> { %v1311_v13 = vpop.f32.mrb[8].mxu0 }
 0x70d   : >> { %v1455_v35 = vadd.f32 %v1311_v13, %v1262_v38   ;;  %v2349_v19 = vpop.f32.mrb[9].mxu0  ;;  %v4420_v13 = vmov %v1258_v22 }
 0x70e   : >> { %v1314_v40 = vpop.f32.mrb[10].mxu0  ;;  %v4424_v19 = vmov %v4161_v27 }
 0x70f   : >> { %v2350_v41 = vpop.f32.mrb[11].mxu0  ;;  %v1463_v52 = vmul.f32 (%p4207_p11), %v2774_v16, %v1455_v35  ;;  %v2235_v40 = vld [vmem:[#allocation18] ss:$0 sm:$0xff] (%p4207_p11)  ;;  %v2768_v16 = vld [vmem:[#allocation25 + $0x18] sm:$0xff] (%p4207_p11)  }
 0x710   : >> { %v1357_v18 = vpop.f32.mrb[8].mxu1 }
 0x711   : >> { %v1456_v37 = vadd.f32 %v1357_v18, %v1263_v12   ;;  %v2355_v43 = vpop.f32.mrb[9].mxu1  ;;  %v4419_v12 = vmov %v1259_v26  ;;  %v4423_v18 = vmov %v4167_v32  ;;  %v1474_v32 = vld [vmem:[#allocation16 + $0xc] sm:$0xf] (%p4207_p11)  ;;  %v1467_v61 = vpack.c.bf16 (%p4207_p11), %v1463_v52, %v1463_v52  ;;  %v2771_v52 = vld [vmem:[#allocation25 + $0x30] sm:$0xff] (%p4207_p11)  }
 0x712   : >> { %v1360_v11 = vpop.f32.mrb[10].mxu1  ;;  %v1619_v27 = vsel (%p4207_p11), %vm1273_vm6, %v1474_v32, 0  ;;  %v2766_v32 = vld [vmem:[#allocation25 + $0x8] sm:$0xff] (%p4207_p11)  }
 0x713   : >> { %v2356_v44 = vpop.f32.mrb[11].mxu1  ;;  %v4418_v11 = vmov %v1260_v31  ;;  %2388 = vmatpush3.bf16.msra.mxu1 (%p4207_p11), %v1619_v27  ;;  %v1464_v4 = vmul.f32 (%p4207_p11), %v2776_v51, %v1456_v37  ;;  %v2767_v27 = vld [vmem:[#allocation25 + $0x10] sm:$0xff] (%p4207_p11)   ;;  %v2770_v51 = vld [vmem:[#allocation25 + $0x28] sm:$0xff] (%p4207_p11)  }
 0x714   : >> { %v1403_v46 = vpop.f32.mrb[12].mxu0  ;;  %2401 = vmatprep.subr.bf16.mxu1 (%p4207_p11), %v3440_v15 }
 0x715   : >> { %v4203_v7 = vadd.f32 %v1403_v46, %v1264_v45   ;;  %v2361_v10 = vpop.f32.mrb[13].mxu0 }
 0x716   : >> { %v1406_v17 = vpop.f32.mrb[14].mxu0  ;;  %v4417_v10 = vmov %v1261_v36  ;;  %986 = sbr.rel (!%p4207_p11) target bundleno = 1206 (0x4b6), region = 195 }
 0x717   : >> { %v4411_v47 = vmov %v4203_v7  ;;  %v2362_v9 = vpop.f32.mrb[15].mxu0  ;;  %v4422_v17 = vmov %v4173_v39  ;;  %v2780_v39 = vpop.eup (%p4207_p11), %2779  ;;  %v2764_v10 = vld [vmem:[#allocation22 + $0x8] sm:$0xff] (%p4207_p11)  }
 0x718   : >> { %v1449_v48 = vpop.f32.mrb[12].mxu1  ;;  %v4414_v7 = vmov %v4411_v47  ;;  %v4416_v9 = vmov %v1455_v35  ;;  %v1465_v57 = vmul.f32 (%p4207_p11), %v2780_v39, %v4411_v47  ;;  %v2763_v47 = vld [vmem:[#allocation22] sm:$0xff] (%p4207_p11)  }
 0x719   : >> { %v1458_v50 = vadd.f32 %v1449_v48, %v1265_v14   ;;  %v2367_v53 = vpop.f32.mrb[13].mxu1  ;;  %v4421_v14 = vmov %v4179_v42  ;;  %v1481_v42 = vsel (%p4207_p11), %vm1273_vm6, %v1471_v55, 0  ;;  %v1468_v7 = vpack.c.bf16 (%p4207_p11), %v1464_v4, %v1464_v4 }
 0x71a   : >> { %v1452_v54 = vpop.f32.mrb[14].mxu1  ;;  %2370 = vmatpush3.bf16.msra.mxu0 (%p4207_p11), %v1481_v42  ;;  %v1469_v58 = vpack.c.bf16 (%p4207_p11), %v1465_v57, %v1465_v57 }
 0x71b   : >> { %v2368_v8 = vpop.f32.mrb[15].mxu1  ;;  %v4413_v6 = vmov %v1458_v50  ;;  %2375 = vmatprep.subr.bf16.mxu0 (%p4207_p11), %v3440_v15  ;;  %v1466_v3 = vmul.f32 (%p4207_p11), %v2778_v60, %v1458_v50  ;;  %v2236_v50 = vld [vmem:[#allocation19] ss:$0 sm:$0xff] (%p4207_p11)  ;;  %v2237_v54 = vld [vmem:[#allocation21] ss:$0 sm:$0xff] (%p4207_p11)  ;;  %v2772_v60 = vld [vmem:[#allocation25 + $0x38] sm:$0xff] (%p4207_p11)  }
 0x71c   : >> { %v4415_v8 = vmov %v1456_v37  ;;  %v1473_v6 = vld [vmem:[#allocation16 + $0x8] sm:$0xf] (%p4207_p11) }
 0x71d   : > { %2372 = vmatmul.mubr.msk.bf16.vlgmr.msra.gmra.mrb[0].mxu0 %vm1017_vm3, %v1467_v61  ;;  %v1470_v5 = vpack.c.bf16 %v1466_v3, %v1466_v3  ;;  %v1573_v56 = vsel %vm1273_vm6, %v1473_v6, 0  ;;  %v2238_v61 = vld [vmem:[#allocation24] ss:$0 sm:$0xff] }
 0x71e   : > { %2376 = vmatpush3.bf16.msra.mxu0 %v1527_v2  ;;  %2377 = vmatprep.mubr.msk.bf16.mxu0 %vm3441_vm1, %v3440_v15 }
 0x71f   : > { %2381 = vmatprep.subr.bf16.mxu0 %v3440_v15  ;;  %2390 = vmatmul.mubr.msk.bf16.vlgmr.msra.gmra.mrb[0].mxu1 %vm1017_vm3, %v1470_v5 }
 0x720   : > { %2417 = vmatprep.mubr.msk.bf16.mxu1 %vm3441_vm1, %v3440_v15 }
 0x725   : > { %2378 = vmatmul.mubr.msk.bf16.vlgmr.msra.gmra.mrb[4].mxu0 %vm1017_vm3, %v1468_v7 }
 0x726   : > { %2382 = vmatpush3.bf16.msra.mxu0 %v1573_v56  ;;  %2383 = vmatprep.mubr.msk.bf16.mxu0 %vm3441_vm1, %v3440_v15 }
 0x727   : > { %2393 = vmatprep.subr.bf16.mxu0 %v3440_v15 }
 0x72d   : > { %2384 = vmatmul.mubr.msk.bf16.vlgmr.msra.gmra.mrb[8].mxu0 %vm1017_vm3, %v1469_v58 }
 0x72e   : > { %2397 = vmatprep.mubr.msk.bf16.mxu0 %vm3441_vm1, %v3440_v15  ;;  %2394 = vmatpush3.bf16.msra.mxu0 %v2763_v47 }
 0x72f   : > { %2395 = vmatprep.subr.bf16.mxu0 %v3440_v15 }
 0x732   : > { %2396 = vmatpush3.bf16.msra.mxu0 %v2764_v10 }
 0x7f0   : > { %v1517_v59 = vpop.f32.mrb[0].mxu0 }
 0x7f1   : > { %v2373_v20 = vpop.f32.mrb[1].mxu0  ;;  %v1661_v25 = vsel %vm718_vm0, %v1517_v59, 0.0 }
 0x7f2   : > { %v1520_v62 = vpop.f32.mrb[2].mxu0  ;;  %v1655_v63 = vpop.f32.mrb[0].mxu1 }
 0x7f3   : > { %v2374_v1 = vpop.f32.mrb[3].mxu0  ;;  %v2391_v21 = vpop.f32.mrb[1].mxu1  ;;  %v1666_v34 = vsel %vm718_vm0, %v1655_v63, 0.0 }
 0x7f4   : > { %v1658_v22 = vpop.f32.mrb[2].mxu1  ;;  %v2242_v1 = vld [vmem:[#allocation27] ss:$0 sm:$0xff] }
 0x7f5   : > { %v2392_v23 = vpop.f32.mrb[3].mxu1 }
 0x7f8   : > { %v1563_v24 = vpop.f32.mrb[4].mxu0 }
 0x7f9   : > { %v1662_v26 = vsel %vm718_vm0, %v1563_v24, 0.0  ;;  %v2379_v28 = vpop.f32.mrb[5].mxu0 }
 0x7fa   : > { %v1663_v29 = vadd.f32 %v1662_v26, %v1661_v25  ;;  %v1566_v30 = vpop.f32.mrb[6].mxu0 }
 0x7fb   : > { %v2380_v31 = vpop.f32.mrb[7].mxu0 }
 0x800   : > { %v1609_v33 = vpop.f32.mrb[8].mxu0 }
 0x801   : > { %v1664_v36 = vsel %vm718_vm0, %v1609_v33, 0.0  ;;  %v2385_v38 = vpop.f32.mrb[9].mxu0 }
 0x802   : > { %v1665_v13 = vadd.f32 %v1664_v36, %v1663_v29  ;;  %v1612_v35 = vpop.f32.mrb[10].mxu0 }
 0x803   : > { %v2386_v19 = vpop.f32.mrb[11].mxu0 }
 0x804   : > { %v1667_v41 = vadd.f32 %v1666_v34, %v1665_v13 }
 0x806   : > { %v1675_v12 = vadd.f32 %v2235_v40, %v1667_v41 }
 0x808   : > { %v4276_v18 = vadd.f32 %v1675_v12, %v3982_v0  ;;  %v2765_v0 = vld [vmem:[#allocation25] sm:$0xff]  }
 0x809   : > { %2402 = vmatpush3.bf16.msra.mxu1 %v2765_v0 }
 0x80a   : > { %v1679_v37 = vsel %vm718_vm0, %v4276_v18, 0.0  ;;  %2403 = vmatprep.subr.bf16.mxu1 %v3440_v15 }
 0x80b   : > { %1680 = vadd.xlane.f32.xlu0 %v1679_v37 }
 0x80d   : > { %2404 = vmatpush3.bf16.msra.mxu1 %v2766_v32 }
 0x80e   : > { %2405 = vmatprep.subr.bf16.mxu1 %v3440_v15 }
 0x811   : > { %2406 = vmatpush3.bf16.msra.mxu1 %v2767_v27 }
 0x812   : > { %2407 = vmatprep.subr.bf16.mxu1 %v3440_v15 }
 0x815   : > { %2408 = vmatpush3.bf16.msra.mxu1 %v2768_v16 }
 0x816   : > { %2409 = vmatprep.subr.bf16.mxu1 %v3440_v15 }
 0x819   : > { %2410 = vmatpush3.bf16.msra.mxu1 %v2769_v49 }
 0x81a   : > { %2411 = vmatprep.subr.bf16.mxu1 %v3440_v15 }
 0x81d   : > { %2412 = vmatpush3.bf16.msra.mxu1 %v2770_v51 }
 0x81e   : > { %2413 = vmatprep.subr.bf16.mxu1 %v3440_v15 }
 0x821   : > { %2414 = vmatpush3.bf16.msra.mxu1 %v2771_v52 }
 0x822   : > { %2415 = vmatprep.subr.bf16.mxu1 %v3440_v15 }
 0x825   : > { %2416 = vmatpush3.bf16.msra.mxu1 %v2772_v60 }
 0x898   : > { %v1681_v43 = vpop.xlane.xlu0 %1680 }
 0x899   : > { %v1682_v11 = vmul.f32 0.03125, %v1681_v43 }
 0x89b   : > { %v1683_v44 = vsub.f32 %v4276_v18, %v1682_v11 }
 0x89d   : > { %v1684_v45 = vmul.f32 %v1683_v44, %v1683_v44 }
 0x89f   : > { %v1685_v46 = vsel %vm718_vm0, %v1684_v45, 0.0 }
 0x8a0   : > { %1686 = vadd.xlane.f32.xlu0 %v1685_v46 }
 0x92d   : > { %v1687_v17 = vpop.xlane.xlu0 %1686 }
 0x92e   : > { %v1688_v9 = vmul.f32 0.03125, %v1687_v17 }
 0x930   : > { %v1689_v14 = vadd.f32 1e-05, %v1688_v9 }
 0x932   : > { %2781 = vrsqrt.f32 %v1689_v14 }
 0x93c   : > { %v2782_v48 = vpop.eup %2781 }
 0x93d   : > { %v1691_v53 = vmul.f32 %v2782_v48, %v1683_v44 }
 0x93f   : > { %v1698_v8 = vmul.f32 %v2236_v50, %v1691_v53 }
 0x941   : > { %v1705_v55 = vadd.f32 %v2237_v54, %v1698_v8 }
 0x943   : > { %v1706_v42 = vpack.c.bf16 %v1705_v55, %v1705_v55 }
 0x945   : > { %2398 = vmatmul.mubr.msk.bf16.vlgmr.msra.gmra.mrb[12].mxu0 %vm718_vm0, %v1706_v42 }
 0xa18   : > { %v1767_v2 = vpop.f32.mrb[12].mxu0 }
 0xa19   : > { %v1768_v3 = vadd.f32 %v2238_v61, %v1767_v2  ;;  %v2399_v4 = vpop.f32.mrb[13].mxu0 }
 0xa1a   : > { %v1770_v5 = vpop.f32.mrb[14].mxu0 }
 0xa1b   : > { %v1774_v6 = vmul.f32 0.044715, %v1768_v3  ;;  %v2400_v7 = vpop.f32.mrb[15].mxu0  ;;  %v1773_v20 = vmul.f32 0.5, %v1768_v3 }
 0xa1d   : > { %v1775_v39 = vmul.f32 %v1774_v6, %v1768_v3 }
 0xa1f   : > { %v1776_v56 = vmul.f32 %v1775_v39, %v1768_v3 }
 0xa21   : > { %v1777_v57 = vadd.f32 %v1776_v56, %v1768_v3 }
 0xa23   : > { %v1778_v58 = vmul.f32 0.7978845, %v1777_v57 }
 0xa25   : > { %2783 = vtanh.f32 %v1778_v58 }
 0xa2f   : > { %v2784_v59 = vpop.eup %2783 }
 0xa30   : > { %v1780_v62 = vadd.f32 1.0, %v2784_v59 }
 0xa32   : > { %v1781_v15 = vmul.f32 %v1780_v62, %v1773_v20 }
 0xa34   : > { %v1782_v63 = vpack.c.bf16 %v1781_v15, %v1781_v15 }
 0xa36   : > { %2418 = vmatmul.mubr.bf16.vlgmr.msra.gmra.mrb[4].mxu1 %v1782_v63 }
 0xb09   : > { %v1888_v21 = vpop.f32.mrb[4].mxu1 }
 0xb0a   : > { %v1889_v22 = vadd.f32 %v2242_v1, %v1888_v21  ;;  %v2419_v23 = vpop.f32.mrb[5].mxu1 }
 0xb0b   : > { %v1891_v24 = vpop.f32.mrb[6].mxu1 }
 0xb0c   : > { %v1894_v25 = vadd.f32 %v1889_v22, %v4276_v18  ;;  %v2420_v26 = vpop.f32.mrb[7].mxu1 }
 0xb0e   : > { %1895 = vst.msk [vmem:[%s4037_s1] sm:$0xff] %vm718_vm0, %v1894_v25 }
 0xb0f   : > { %3220 = shalt.err (!%p3217_p9)
}
 0xb10   : > { %s3221_s3 = scalar_lea.hbm %s4297_s2, 128  ;;  %s3225_s17 = scalar_lea.hbm %s4426_s30, 256 }
 0xb11   : > { %p3222_p4 = scmp.ne.s32.totalorder %s4297_s2, %s3221_s3  ;;  %p3226_p1 = scmp.lt.u32.totalorder %s4297_s2, %s4426_s30 }
 0xb12   : > { %p3227_p12 = scmp.lt.u32.totalorder %s3225_s17, %s3221_s3  ;;  %p3229_p0 = scmp.lt.u32.totalorder %s3221_s3, %s4297_s2 }
 0xb13   : > { %p3223_p6 = pnand %p3222_p4, %p4427_p5 }
 0xb14   : > { %p3228_p11 = por %p3227_p12, %p3226_p1 }
 0xb15   : > { %p3224_p3 = pneg %p3223_p6 }
 0xb16   : > { %p3230_p7 = por %p3229_p0, %p3228_p11 }
 0xb18   : > { %p3231_p10 = pnand %p3230_p7, %p3224_p3 }
 0xb1a   : > { %3234 = shalt.err (!%p3231_p10)
}
 0xb1b   : > { %2479 = dma.vmem_to_hbm [thread:$0]  (%p4427_p5), %s4299_s16, 128, %s4297_s2, %s1897_s18  }
 0xb1c PF: > { %s4428_s29 = sld [smem:[#allocation38_spill]]  ;;  %p4429_p13 = scmp.ne.s32.totalorder %s4403_s19, 0 }
 0xb1d   : > { %p4430_p2 = scmp.ge.s32.totalorder %s3369_s23, 2 }
 0xb1f   : > { %p2529_p8 = pnand %p4430_p2, %p4429_p13 }
 0xb22   : > { %s1923_s15 = sand.u32 1, %s4428_s29  }
 0xb23   : > { %s1924_s24 = scalar_lea.sflag [#allocation6], %s1923_s15 }
 0xb24   : > { %3344 = dma.done.wait (!%p2529_p8), %s1924_s24, 128  }
 0xb25   : > { %3346 = vsyncadd (!%p2529_p8), %s1924_s24, 4294967168  ;;  %s38_s23 = sadd.s32 1, %s3369_s23   ;;  %s4431_s18 = sld [smem:[#allocation39_spill]] }
 0xb26   : > { %p35_p9 = scmp.ge.s32.totalorder %s38_s23, 4   ;;  %s4432_s19 = sld [smem:[#allocation40_spill]] }
 0xb27   : > { %s4433_s0 = smov %s4438_s20  ;;  %s4434_s20 = smov %s3894_s28 }
 0xb28   : > { %s4435_s21 = smov %s3365_s22  ;;  %s4436_s22 = smov %s4433_s0 }
 0xb29   :  { %37 = sbr.rel (!%p35_p9) target bundleno = 19 (0x13), region = 206 }
 0xb30   :  { %1929 = vsyncpa [#allocation5], 1 }
 0xb31   :  { %1931 = vsyncpa [#allocation5 + $0x1], 1 }
 0xb32   :  { %1932 = vsyncpa [#allocation8], 1 }
 0xb33   :  { %1933 = vsyncpa [#allocation11], 1 }
 0xb34   :  { %1934 = vsyncpa [#allocation14], 1 }
 0xb35   :  { %1935 = vsyncpa [#allocation17], 1 }
 0xb36   :  { %1936 = vsyncpa [#allocation20], 1 }
 0xb37   :  { %1937 = vsyncpa [#allocation23], 1 }
 0xb38   :  { %1938 = vsyncpa [#allocation26], 1 }
 0xb39   :  { %1939 = vsyncpa [#allocation6], 1 }
 0xb3a   :  { %1941 = vsyncpa [#allocation6 + $0x1], 1 }

</bundles_post_ra>
